<compile_context>
chip_gen: v6e
topology: v6e:2x2x1
jax: 0.10.0
libtpu: 0.0.40
codegen_flags: <defaults>
</compile_context>

<pallas_src>
import functools

import jax
import jax.numpy as jnp
from jax.experimental import pallas as pl
from jax.experimental.pallas import tpu as pltpu


# ----------------------------------------------------------------------------
# Fused kernel: encoder GRU + decoder GRU + general attention + fc_final +
# log_softmax, single grid step, everything VMEM resident.
# Gate order follows PyTorch nn.GRU: (r, z, n).
# ----------------------------------------------------------------------------
def _fused_kernel(x_en_ref, x_de_ref,
                  ewih_ref, ewhh_ref, ebih_ref, ebhh_ref,
                  dwih_ref, dwhh_ref, dbih_ref, dbhh_ref,
                  wa_ref, wf_ref,
                  score_ref, *, hidden, loc_size):
    H = hidden
    V = loc_size
    B, L_en, D = x_en_ref.shape
    _, L_de, _ = x_de_ref.shape

    def run_gru(x_seq, T, w_ih, w_hh, b_ih, b_hh):
        # One fused MXU call for the input projection of EVERY time step.
        gi_all = (jnp.dot(x_seq.reshape(B * T, D), w_ih,
                          preferred_element_type=jnp.float32) + b_ih
                  ).reshape(B, T, 3 * H)
        h = jnp.zeros((B, H), jnp.float32)
        hs = []
        for t in range(T):  # static, fully unrolled recurrence (T <= 16)
            gi = gi_all[:, t, :]                                        # (B, 3H)
            gh = jnp.dot(h, w_hh, preferred_element_type=jnp.float32) + b_hh
            r = jax.nn.sigmoid(gi[:, :H] + gh[:, :H])
            z = jax.nn.sigmoid(gi[:, H:2 * H] + gh[:, H:2 * H])
            n = jnp.tanh(gi[:, 2 * H:] + r * gh[:, 2 * H:])
            h = (1.0 - z) * n + z * h
            hs.append(h)
        return jnp.stack(hs, axis=1)                                    # (B, T, H)

    traj_en = run_gru(x_en_ref[...], L_en, ewih_ref[...], ewhh_ref[...],
                      ebih_ref[...], ebhh_ref[...])
    traj_de = run_gru(x_de_ref[...], L_de, dwih_ref[...], dwhh_ref[...],
                      dbih_ref[...], dbhh_ref[...])

    # general attention: fc = traj_en @ W_attn^T ; wei = softmax(traj_de @ fc^T)
    fc = jnp.dot(traj_en.reshape(B * L_en, H), wa_ref[...],
                 preferred_element_type=jnp.float32).reshape(B, L_en, H)
    logits = jnp.einsum('bqh,bkh->bqk', traj_de, fc,
                        preferred_element_type=jnp.float32)             # (B, L_de, L_en)
    logits = logits - jnp.max(logits, axis=-1, keepdims=True)
    p = jnp.exp(logits)
    wei = p * pl.reciprocal(jnp.sum(p, axis=-1, keepdims=True), approx=True)

    # context = wei @ traj_en
    context = jnp.einsum('bqk,bkh->bqh', wei, traj_en,
                         preferred_element_type=jnp.float32)            # (B, L_de, H)

    # fc_final(concat([traj_de, context])) with one fused (2H, Vp) weight.
    cat = jnp.concatenate([traj_de, context], axis=-1).reshape(B * L_de, 2 * H)
    y = jnp.dot(cat, wf_ref[...], preferred_element_type=jnp.float32)   # (B*L_de, Vp)

    # mask out padded vocabulary lanes, then log_softmax over locations
    col = jax.lax.broadcasted_iota(jnp.int32, y.shape, 1)
    y = jnp.where(col < V, y, -1e30)
    m = jnp.max(y, axis=-1, keepdims=True)
    s = y - m
    lse = jnp.log(jnp.sum(jnp.exp(s), axis=-1, keepdims=True))
    score_ref[...] = s - lse                                            # lane-dense store


def fused_forward(x_en, x_de, params, loc_size):
    B, L_en, D = x_en.shape
    _, L_de, _ = x_de.shape
    H3 = params["enc_w_ih"].shape[-1]
    H = H3 // 3
    Vp = params["wf"].shape[-1]

    kernel = functools.partial(_fused_kernel, hidden=H, loc_size=loc_size)
    return pl.pallas_call(
        kernel,
        out_shape=jax.ShapeDtypeStruct((B * L_de, Vp), jnp.float32),
        grid_spec=pltpu.PrefetchScalarGridSpec(
            num_scalar_prefetch=0,
            grid=(1,),
            in_specs=[
                pl.BlockSpec((B, L_en, D), lambda i: (0, 0, 0)),   # x_en (batch-major)
                pl.BlockSpec((B, L_de, D), lambda i: (0, 0, 0)),   # x_de (batch-major)
                pl.BlockSpec((D, H3), lambda i: (0, 0)),           # enc W_ih (D, 3H)
                pl.BlockSpec((H, H3), lambda i: (0, 0)),           # enc W_hh (H, 3H)
                pl.BlockSpec((1, H3), lambda i: (0, 0)),           # enc b_ih
                pl.BlockSpec((1, H3), lambda i: (0, 0)),           # enc b_hh
                pl.BlockSpec((D, H3), lambda i: (0, 0)),           # dec W_ih
                pl.BlockSpec((H, H3), lambda i: (0, 0)),           # dec W_hh
                pl.BlockSpec((1, H3), lambda i: (0, 0)),           # dec b_ih
                pl.BlockSpec((1, H3), lambda i: (0, 0)),           # dec b_hh
                pl.BlockSpec((H, H), lambda i: (0, 0)),            # attn W^T
                pl.BlockSpec((2 * H, Vp), lambda i: (0, 0)),       # fused fc_final weight
            ],
            out_specs=pl.BlockSpec((B * L_de, Vp), lambda i: (0, 0)),
        ),
        compiler_params=pltpu.CompilerParams(
            dimension_semantics=("arbitrary",)),
    )(x_en, x_de,
      params["enc_w_ih"], params["enc_w_hh"], params["enc_b_ih"], params["enc_b_hh"],
      params["dec_w_ih"], params["dec_w_hh"], params["dec_b_ih"], params["dec_b_hh"],
      params["attn_w_t"], params["wf"])


# ----------------------------------------------------------------------------
# Full forward pass (embedding gather + slicing as host glue, rest fused kernel).
# ----------------------------------------------------------------------------
def traj_pre_local_attn_long_forward(params, loc, tim, target_len):
    B = loc.shape[0]
    loc_size = params["emb_loc"].shape[0]
    Vp = params["wf"].shape[-1]

    loc_emb = jnp.take(params["emb_loc"], loc, axis=0)      # (B, L, loc_emb)
    tim_emb = jnp.take(params["emb_tim"], tim, axis=0)      # (B, L, tim_emb)
    x = jnp.concatenate([loc_emb, tim_emb], axis=2)         # (B, L, D)
    # dropout -> identity at inference

    x_en = x[:, :-target_len, :]                            # (B, L_en, D)
    x_de = x[:, -target_len:, :]                            # (B, L_de, D)

    score_pad = fused_forward(x_en, x_de, params, loc_size)     # (B*L_de, Vp)
    return score_pad.reshape(B, target_len, Vp)[:, :, :loc_size]


# ----------------------------------------------------------------------------
# Deterministic parameter initialization (synthetic, mirrors module shapes).
# (attn Linear and fc_final are bias=False in the reference module.)
# ----------------------------------------------------------------------------
def _xavier_uniform(key, shape, fan_in, fan_out):
    lim = (6.0 / (fan_in + fan_out)) ** 0.5
    return jax.random.uniform(key, shape, jnp.float32, -lim, lim)


def _orthogonal(key, n):
    a = jax.random.normal(key, (n, n), jnp.float32)
    q, r = jnp.linalg.qr(a)
    return q * jnp.sign(jnp.diagonal(r))[None, :]


def init_params(key, loc_size, loc_emb_size, time_size, tim_emb_size, hidden_size):
    D = loc_emb_size + tim_emb_size
    H = hidden_size
    Vp = ((loc_size + 127) // 128) * 128        # pad loc_size to a lane multiple of 128
    ks = jax.random.split(key, 8)

    def gru_params(k_ih, k_hh):
        k_ihs = jax.random.split(k_ih, 3)
        k_hhs = jax.random.split(k_hh, 3)
        # fused gate layout (r | z | n) along the last (lane) axis, pre-transposed
        w_ih = jnp.concatenate([_xavier_uniform(k, (D, H), D, 3 * H) for k in k_ihs],
                               axis=-1)                                   # (D, 3H)
        w_hh = jnp.concatenate([_orthogonal(k, H) for k in k_hhs], axis=-1)  # (H, 3H)
        b_ih = jnp.zeros((1, 3 * H), jnp.float32)   # zero per init_weights
        b_hh = jnp.zeros((1, 3 * H), jnp.float32)
        return w_ih, w_hh, b_ih, b_hh

    enc_w_ih, enc_w_hh, enc_b_ih, enc_b_hh = gru_params(ks[0], ks[1])
    dec_w_ih, dec_w_hh, dec_b_ih, dec_b_hh = gru_params(ks[2], ks[3])

    lim_a = 1.0 / (H ** 0.5)
    lim_f = 1.0 / ((2 * H) ** 0.5)
    attn_w = jax.random.uniform(ks[4], (H, H), jnp.float32, -lim_a, lim_a)       # (out, in)
    fc_final = jax.random.uniform(ks[5], (loc_size, 2 * H), jnp.float32, -lim_f, lim_f)
    # fused fc_final weight, transposed and zero-padded along the vocab (lane) dim
    wf = jnp.zeros((2 * H, Vp), jnp.float32).at[:, :loc_size].set(fc_final.T)

    return {
        "emb_loc": jax.random.normal(ks[6], (loc_size, loc_emb_size), jnp.float32),
        "emb_tim": jax.random.normal(ks[7], (time_size, tim_emb_size), jnp.float32),
        "enc_w_ih": enc_w_ih, "enc_w_hh": enc_w_hh, "enc_b_ih": enc_b_ih, "enc_b_hh": enc_b_hh,
        "dec_w_ih": dec_w_ih, "dec_w_hh": dec_w_hh, "dec_b_ih": dec_b_ih, "dec_b_hh": dec_b_hh,
        "attn_w_t": attn_w.T,      # used as en @ attn_w_t == Linear(en)
        "wf": wf,                  # (2H, Vp) fused [fc_de ; fc_ctx], vocab padded to 128
    }


if __name__ == "__main__":
    loc_size, loc_emb_size = 64, 16
    time_size, tim_emb_size = 32, 16
    hidden_size = 32
    B, L, target_len = 2, 12, 4

    key = jax.random.PRNGKey(0)
    k_params, k_loc, k_tim = jax.random.split(key, 3)
    params = init_params(k_params, loc_size, loc_emb_size, time_size,
                         tim_emb_size, hidden_size)

    loc = jax.random.randint(k_loc, (B, L), 0, loc_size, dtype=jnp.int32)
    tim = jax.random.randint(k_tim, (B, L), 0, time_size, dtype=jnp.int32)

    fwd = jax.jit(functools.partial(traj_pre_local_attn_long_forward,
                                    target_len=target_len))
    score = fwd(params, loc, tim)
    score = jax.block_until_ready(score)

    assert score.shape == (B, target_len, loc_size), score.shape
    assert bool(jnp.all(jnp.isfinite(score)))
    # log_softmax sanity: rows exponentiate and sum to 1
    row_sums = jnp.sum(jnp.exp(score), axis=-1)
    assert bool(jnp.all(jnp.abs(row_sums - 1.0) < 1e-3))

    print("KERNEL_OK")
</pallas_src>

<mosaic_0001>
module attributes {stable_mosaic.version = 11 : i64} {
  func.func @_fused_kernel(%arg0: i32, %arg1: memref<2x8x32xf32, #tpu.memory_space<vmem>>, %arg2: memref<2x4x32xf32, #tpu.memory_space<vmem>>, %arg3: memref<32x96xf32, #tpu.memory_space<vmem>>, %arg4: memref<32x96xf32, #tpu.memory_space<vmem>>, %arg5: memref<1x96xf32, #tpu.memory_space<vmem>>, %arg6: memref<1x96xf32, #tpu.memory_space<vmem>>, %arg7: memref<32x96xf32, #tpu.memory_space<vmem>>, %arg8: memref<32x96xf32, #tpu.memory_space<vmem>>, %arg9: memref<1x96xf32, #tpu.memory_space<vmem>>, %arg10: memref<1x96xf32, #tpu.memory_space<vmem>>, %arg11: memref<32x32xf32, #tpu.memory_space<vmem>>, %arg12: memref<64x128xf32, #tpu.memory_space<vmem>>, %arg13: memref<8x128xf32, #tpu.memory_space<vmem>>) attributes {dimension_semantics = [#tpu.dimension_semantics<arbitrary>], iteration_bounds = array<i64: 1>, scalar_prefetch = 0 : i64, scratch_operands = 0 : i64, tpu.core_type = #tpu.core_type<tc>, window_params = [{pipeline_mode = #tpu.pipeline_mode<synchronous>, transform_indices = @transform_0, window_bounds = array<i64: 2, 8, 32>}, {pipeline_mode = #tpu.pipeline_mode<synchronous>, transform_indices = @transform_1, window_bounds = array<i64: 2, 4, 32>}, {pipeline_mode = #tpu.pipeline_mode<synchronous>, transform_indices = @transform_2, window_bounds = array<i64: 32, 96>}, {pipeline_mode = #tpu.pipeline_mode<synchronous>, transform_indices = @transform_3, window_bounds = array<i64: 32, 96>}, {pipeline_mode = #tpu.pipeline_mode<synchronous>, transform_indices = @transform_4, window_bounds = array<i64: 1, 96>}, {pipeline_mode = #tpu.pipeline_mode<synchronous>, transform_indices = @transform_5, window_bounds = array<i64: 1, 96>}, {pipeline_mode = #tpu.pipeline_mode<synchronous>, transform_indices = @transform_6, window_bounds = array<i64: 32, 96>}, {pipeline_mode = #tpu.pipeline_mode<synchronous>, transform_indices = @transform_7, window_bounds = array<i64: 32, 96>}, {pipeline_mode = #tpu.pipeline_mode<synchronous>, transform_indices = @transform_8, window_bounds = array<i64: 1, 96>}, {pipeline_mode = #tpu.pipeline_mode<synchronous>, transform_indices = @transform_9, window_bounds = array<i64: 1, 96>}, {pipeline_mode = #tpu.pipeline_mode<synchronous>, transform_indices = @transform_10, window_bounds = array<i64: 32, 32>}, {pipeline_mode = #tpu.pipeline_mode<synchronous>, transform_indices = @transform_11, window_bounds = array<i64: 64, 128>}, {pipeline_mode = #tpu.pipeline_mode<synchronous>, transform_indices = @transform_12, window_bounds = array<i64: 8, 128>}]} {
    %c0 = arith.constant 0 : index
    %c0_0 = arith.constant 0 : index
    %c0_1 = arith.constant 0 : index
    %0 = vector.load %arg1[%c0, %c0_0, %c0_1] : memref<2x8x32xf32, #tpu.memory_space<vmem>>, vector<2x8x32xf32>
    %c0_2 = arith.constant 0 : index
    %c0_3 = arith.constant 0 : index
    %1 = vector.load %arg3[%c0_2, %c0_3] : memref<32x96xf32, #tpu.memory_space<vmem>>, vector<32x96xf32>
    %c0_4 = arith.constant 0 : index
    %c0_5 = arith.constant 0 : index
    %2 = vector.load %arg4[%c0_4, %c0_5] : memref<32x96xf32, #tpu.memory_space<vmem>>, vector<32x96xf32>
    %c0_6 = arith.constant 0 : index
    %c0_7 = arith.constant 0 : index
    %3 = vector.load %arg5[%c0_6, %c0_7] : memref<1x96xf32, #tpu.memory_space<vmem>>, vector<1x96xf32>
    %c0_8 = arith.constant 0 : index
    %c0_9 = arith.constant 0 : index
    %4 = vector.load %arg6[%c0_8, %c0_9] : memref<1x96xf32, #tpu.memory_space<vmem>>, vector<1x96xf32>
    %5 = vector.shape_cast %0 : vector<2x8x32xf32> to vector<16x32xf32>
    %cst = arith.constant dense<0.000000e+00> : vector<16x96xf32>
    %6 = tpu.matmul %5, %1, %cst {dimension_numbers = #tpu.dot_dimension_numbers<[1], [0], [0], [1], [0, 0, 1, 1], [], []>} : vector<16x32xf32>, vector<32x96xf32>, vector<16x96xf32> -> vector<16x96xf32>
    %7 = vector.broadcast %3 : vector<1x96xf32> to vector<16x96xf32>
    %8 = arith.addf %6, %7 : vector<16x96xf32>
    %9 = vector.shape_cast %8 : vector<16x96xf32> to vector<2x8x96xf32>
    %cst_10 = arith.constant 0.000000e+00 : f32
    %10 = vector.broadcast %cst_10 : f32 to vector<2x32xf32>
    %11 = vector.extract_strided_slice %9 {offsets = [0, 0, 0], sizes = [2, 1, 96], strides = [1, 1, 1]} : vector<2x8x96xf32> to vector<2x1x96xf32>
    %12 = vector.shape_cast %11 : vector<2x1x96xf32> to vector<2x96xf32>
    %cst_11 = arith.constant dense<0.000000e+00> : vector<2x96xf32>
    %13 = tpu.matmul %10, %2, %cst_11 {dimension_numbers = #tpu.dot_dimension_numbers<[1], [0], [0], [1], [0, 0, 1, 1], [], []>} : vector<2x32xf32>, vector<32x96xf32>, vector<2x96xf32> -> vector<2x96xf32>
    %14 = vector.broadcast %4 : vector<1x96xf32> to vector<2x96xf32>
    %15 = arith.addf %13, %14 : vector<2x96xf32>
    %16 = vector.extract_strided_slice %12 {offsets = [0, 0], sizes = [2, 32], strides = [1, 1]} : vector<2x96xf32> to vector<2x32xf32>
    %17 = vector.extract_strided_slice %15 {offsets = [0, 0], sizes = [2, 32], strides = [1, 1]} : vector<2x96xf32> to vector<2x32xf32>
    %18 = arith.addf %16, %17 : vector<2x32xf32>
    %19 = arith.negf %18 : vector<2x32xf32>
    %20 = math.exp %19 : vector<2x32xf32>
    %cst_12 = arith.constant 1.000000e+00 : f32
    %21 = vector.broadcast %cst_12 : f32 to vector<2x32xf32>
    %22 = arith.addf %21, %20 : vector<2x32xf32>
    %23 = arith.divf %21, %22 : vector<2x32xf32>
    %24 = vector.extract_strided_slice %12 {offsets = [0, 32], sizes = [2, 32], strides = [1, 1]} : vector<2x96xf32> to vector<2x32xf32>
    %25 = vector.extract_strided_slice %15 {offsets = [0, 32], sizes = [2, 32], strides = [1, 1]} : vector<2x96xf32> to vector<2x32xf32>
    %26 = arith.addf %24, %25 : vector<2x32xf32>
    %27 = arith.negf %26 : vector<2x32xf32>
    %28 = math.exp %27 : vector<2x32xf32>
    %cst_13 = arith.constant 1.000000e+00 : f32
    %29 = vector.broadcast %cst_13 : f32 to vector<2x32xf32>
    %30 = arith.addf %29, %28 : vector<2x32xf32>
    %31 = arith.divf %29, %30 : vector<2x32xf32>
    %32 = vector.extract_strided_slice %12 {offsets = [0, 64], sizes = [2, 32], strides = [1, 1]} : vector<2x96xf32> to vector<2x32xf32>
    %33 = vector.extract_strided_slice %15 {offsets = [0, 64], sizes = [2, 32], strides = [1, 1]} : vector<2x96xf32> to vector<2x32xf32>
    %34 = arith.mulf %23, %33 : vector<2x32xf32>
    %35 = arith.addf %32, %34 : vector<2x32xf32>
    %36 = math.tanh %35 : vector<2x32xf32>
    %cst_14 = arith.constant 1.000000e+00 : f32
    %37 = vector.broadcast %cst_14 : f32 to vector<2x32xf32>
    %38 = arith.subf %37, %31 : vector<2x32xf32>
    %39 = arith.mulf %38, %36 : vector<2x32xf32>
    %40 = arith.mulf %31, %10 : vector<2x32xf32>
    %41 = arith.addf %39, %40 : vector<2x32xf32>
    %42 = vector.extract_strided_slice %9 {offsets = [0, 1, 0], sizes = [2, 1, 96], strides = [1, 1, 1]} : vector<2x8x96xf32> to vector<2x1x96xf32>
    %43 = vector.shape_cast %42 : vector<2x1x96xf32> to vector<2x96xf32>
    %cst_15 = arith.constant dense<0.000000e+00> : vector<2x96xf32>
    %44 = tpu.matmul %41, %2, %cst_15 {dimension_numbers = #tpu.dot_dimension_numbers<[1], [0], [0], [1], [0, 0, 1, 1], [], []>} : vector<2x32xf32>, vector<32x96xf32>, vector<2x96xf32> -> vector<2x96xf32>
    %45 = vector.broadcast %4 : vector<1x96xf32> to vector<2x96xf32>
    %46 = arith.addf %44, %45 : vector<2x96xf32>
    %47 = vector.extract_strided_slice %43 {offsets = [0, 0], sizes = [2, 32], strides = [1, 1]} : vector<2x96xf32> to vector<2x32xf32>
    %48 = vector.extract_strided_slice %46 {offsets = [0, 0], sizes = [2, 32], strides = [1, 1]} : vector<2x96xf32> to vector<2x32xf32>
    %49 = arith.addf %47, %48 : vector<2x32xf32>
    %50 = arith.negf %49 : vector<2x32xf32>
    %51 = math.exp %50 : vector<2x32xf32>
    %cst_16 = arith.constant 1.000000e+00 : f32
    %52 = vector.broadcast %cst_16 : f32 to vector<2x32xf32>
    %53 = arith.addf %52, %51 : vector<2x32xf32>
    %54 = arith.divf %52, %53 : vector<2x32xf32>
    %55 = vector.extract_strided_slice %43 {offsets = [0, 32], sizes = [2, 32], strides = [1, 1]} : vector<2x96xf32> to vector<2x32xf32>
    %56 = vector.extract_strided_slice %46 {offsets = [0, 32], sizes = [2, 32], strides = [1, 1]} : vector<2x96xf32> to vector<2x32xf32>
    %57 = arith.addf %55, %56 : vector<2x32xf32>
    %58 = arith.negf %57 : vector<2x32xf32>
    %59 = math.exp %58 : vector<2x32xf32>
    %cst_17 = arith.constant 1.000000e+00 : f32
    %60 = vector.broadcast %cst_17 : f32 to vector<2x32xf32>
    %61 = arith.addf %60, %59 : vector<2x32xf32>
    %62 = arith.divf %60, %61 : vector<2x32xf32>
    %63 = vector.extract_strided_slice %43 {offsets = [0, 64], sizes = [2, 32], strides = [1, 1]} : vector<2x96xf32> to vector<2x32xf32>
    %64 = vector.extract_strided_slice %46 {offsets = [0, 64], sizes = [2, 32], strides = [1, 1]} : vector<2x96xf32> to vector<2x32xf32>
    %65 = arith.mulf %54, %64 : vector<2x32xf32>
    %66 = arith.addf %63, %65 : vector<2x32xf32>
    %67 = math.tanh %66 : vector<2x32xf32>
    %cst_18 = arith.constant 1.000000e+00 : f32
    %68 = vector.broadcast %cst_18 : f32 to vector<2x32xf32>
    %69 = arith.subf %68, %62 : vector<2x32xf32>
    %70 = arith.mulf %69, %67 : vector<2x32xf32>
    %71 = arith.mulf %62, %41 : vector<2x32xf32>
    %72 = arith.addf %70, %71 : vector<2x32xf32>
    %73 = vector.extract_strided_slice %9 {offsets = [0, 2, 0], sizes = [2, 1, 96], strides = [1, 1, 1]} : vector<2x8x96xf32> to vector<2x1x96xf32>
    %74 = vector.shape_cast %73 : vector<2x1x96xf32> to vector<2x96xf32>
    %cst_19 = arith.constant dense<0.000000e+00> : vector<2x96xf32>
    %75 = tpu.matmul %72, %2, %cst_19 {dimension_numbers = #tpu.dot_dimension_numbers<[1], [0], [0], [1], [0, 0, 1, 1], [], []>} : vector<2x32xf32>, vector<32x96xf32>, vector<2x96xf32> -> vector<2x96xf32>
    %76 = vector.broadcast %4 : vector<1x96xf32> to vector<2x96xf32>
    %77 = arith.addf %75, %76 : vector<2x96xf32>
    %78 = vector.extract_strided_slice %74 {offsets = [0, 0], sizes = [2, 32], strides = [1, 1]} : vector<2x96xf32> to vector<2x32xf32>
    %79 = vector.extract_strided_slice %77 {offsets = [0, 0], sizes = [2, 32], strides = [1, 1]} : vector<2x96xf32> to vector<2x32xf32>
    %80 = arith.addf %78, %79 : vector<2x32xf32>
    %81 = arith.negf %80 : vector<2x32xf32>
    %82 = math.exp %81 : vector<2x32xf32>
    %cst_20 = arith.constant 1.000000e+00 : f32
    %83 = vector.broadcast %cst_20 : f32 to vector<2x32xf32>
    %84 = arith.addf %83, %82 : vector<2x32xf32>
    %85 = arith.divf %83, %84 : vector<2x32xf32>
    %86 = vector.extract_strided_slice %74 {offsets = [0, 32], sizes = [2, 32], strides = [1, 1]} : vector<2x96xf32> to vector<2x32xf32>
    %87 = vector.extract_strided_slice %77 {offsets = [0, 32], sizes = [2, 32], strides = [1, 1]} : vector<2x96xf32> to vector<2x32xf32>
    %88 = arith.addf %86, %87 : vector<2x32xf32>
    %89 = arith.negf %88 : vector<2x32xf32>
    %90 = math.exp %89 : vector<2x32xf32>
    %cst_21 = arith.constant 1.000000e+00 : f32
    %91 = vector.broadcast %cst_21 : f32 to vector<2x32xf32>
    %92 = arith.addf %91, %90 : vector<2x32xf32>
    %93 = arith.divf %91, %92 : vector<2x32xf32>
    %94 = vector.extract_strided_slice %74 {offsets = [0, 64], sizes = [2, 32], strides = [1, 1]} : vector<2x96xf32> to vector<2x32xf32>
    %95 = vector.extract_strided_slice %77 {offsets = [0, 64], sizes = [2, 32], strides = [1, 1]} : vector<2x96xf32> to vector<2x32xf32>
    %96 = arith.mulf %85, %95 : vector<2x32xf32>
    %97 = arith.addf %94, %96 : vector<2x32xf32>
    %98 = math.tanh %97 : vector<2x32xf32>
    %cst_22 = arith.constant 1.000000e+00 : f32
    %99 = vector.broadcast %cst_22 : f32 to vector<2x32xf32>
    %100 = arith.subf %99, %93 : vector<2x32xf32>
    %101 = arith.mulf %100, %98 : vector<2x32xf32>
    %102 = arith.mulf %93, %72 : vector<2x32xf32>
    %103 = arith.addf %101, %102 : vector<2x32xf32>
    %104 = vector.extract_strided_slice %9 {offsets = [0, 3, 0], sizes = [2, 1, 96], strides = [1, 1, 1]} : vector<2x8x96xf32> to vector<2x1x96xf32>
    %105 = vector.shape_cast %104 : vector<2x1x96xf32> to vector<2x96xf32>
    %cst_23 = arith.constant dense<0.000000e+00> : vector<2x96xf32>
    %106 = tpu.matmul %103, %2, %cst_23 {dimension_numbers = #tpu.dot_dimension_numbers<[1], [0], [0], [1], [0, 0, 1, 1], [], []>} : vector<2x32xf32>, vector<32x96xf32>, vector<2x96xf32> -> vector<2x96xf32>
    %107 = vector.broadcast %4 : vector<1x96xf32> to vector<2x96xf32>
    %108 = arith.addf %106, %107 : vector<2x96xf32>
    %109 = vector.extract_strided_slice %105 {offsets = [0, 0], sizes = [2, 32], strides = [1, 1]} : vector<2x96xf32> to vector<2x32xf32>
    %110 = vector.extract_strided_slice %108 {offsets = [0, 0], sizes = [2, 32], strides = [1, 1]} : vector<2x96xf32> to vector<2x32xf32>
    %111 = arith.addf %109, %110 : vector<2x32xf32>
    %112 = arith.negf %111 : vector<2x32xf32>
    %113 = math.exp %112 : vector<2x32xf32>
    %cst_24 = arith.constant 1.000000e+00 : f32
    %114 = vector.broadcast %cst_24 : f32 to vector<2x32xf32>
    %115 = arith.addf %114, %113 : vector<2x32xf32>
    %116 = arith.divf %114, %115 : vector<2x32xf32>
    %117 = vector.extract_strided_slice %105 {offsets = [0, 32], sizes = [2, 32], strides = [1, 1]} : vector<2x96xf32> to vector<2x32xf32>
    %118 = vector.extract_strided_slice %108 {offsets = [0, 32], sizes = [2, 32], strides = [1, 1]} : vector<2x96xf32> to vector<2x32xf32>
    %119 = arith.addf %117, %118 : vector<2x32xf32>
    %120 = arith.negf %119 : vector<2x32xf32>
    %121 = math.exp %120 : vector<2x32xf32>
    %cst_25 = arith.constant 1.000000e+00 : f32
    %122 = vector.broadcast %cst_25 : f32 to vector<2x32xf32>
    %123 = arith.addf %122, %121 : vector<2x32xf32>
    %124 = arith.divf %122, %123 : vector<2x32xf32>
    %125 = vector.extract_strided_slice %105 {offsets = [0, 64], sizes = [2, 32], strides = [1, 1]} : vector<2x96xf32> to vector<2x32xf32>
    %126 = vector.extract_strided_slice %108 {offsets = [0, 64], sizes = [2, 32], strides = [1, 1]} : vector<2x96xf32> to vector<2x32xf32>
    %127 = arith.mulf %116, %126 : vector<2x32xf32>
    %128 = arith.addf %125, %127 : vector<2x32xf32>
    %129 = math.tanh %128 : vector<2x32xf32>
    %cst_26 = arith.constant 1.000000e+00 : f32
    %130 = vector.broadcast %cst_26 : f32 to vector<2x32xf32>
    %131 = arith.subf %130, %124 : vector<2x32xf32>
    %132 = arith.mulf %131, %129 : vector<2x32xf32>
    %133 = arith.mulf %124, %103 : vector<2x32xf32>
    %134 = arith.addf %132, %133 : vector<2x32xf32>
    %135 = vector.extract_strided_slice %9 {offsets = [0, 4, 0], sizes = [2, 1, 96], strides = [1, 1, 1]} : vector<2x8x96xf32> to vector<2x1x96xf32>
    %136 = vector.shape_cast %135 : vector<2x1x96xf32> to vector<2x96xf32>
    %cst_27 = arith.constant dense<0.000000e+00> : vector<2x96xf32>
    %137 = tpu.matmul %134, %2, %cst_27 {dimension_numbers = #tpu.dot_dimension_numbers<[1], [0], [0], [1], [0, 0, 1, 1], [], []>} : vector<2x32xf32>, vector<32x96xf32>, vector<2x96xf32> -> vector<2x96xf32>
    %138 = vector.broadcast %4 : vector<1x96xf32> to vector<2x96xf32>
    %139 = arith.addf %137, %138 : vector<2x96xf32>
    %140 = vector.extract_strided_slice %136 {offsets = [0, 0], sizes = [2, 32], strides = [1, 1]} : vector<2x96xf32> to vector<2x32xf32>
    %141 = vector.extract_strided_slice %139 {offsets = [0, 0], sizes = [2, 32], strides = [1, 1]} : vector<2x96xf32> to vector<2x32xf32>
    %142 = arith.addf %140, %141 : vector<2x32xf32>
    %143 = arith.negf %142 : vector<2x32xf32>
    %144 = math.exp %143 : vector<2x32xf32>
    %cst_28 = arith.constant 1.000000e+00 : f32
    %145 = vector.broadcast %cst_28 : f32 to vector<2x32xf32>
    %146 = arith.addf %145, %144 : vector<2x32xf32>
    %147 = arith.divf %145, %146 : vector<2x32xf32>
    %148 = vector.extract_strided_slice %136 {offsets = [0, 32], sizes = [2, 32], strides = [1, 1]} : vector<2x96xf32> to vector<2x32xf32>
    %149 = vector.extract_strided_slice %139 {offsets = [0, 32], sizes = [2, 32], strides = [1, 1]} : vector<2x96xf32> to vector<2x32xf32>
    %150 = arith.addf %148, %149 : vector<2x32xf32>
    %151 = arith.negf %150 : vector<2x32xf32>
    %152 = math.exp %151 : vector<2x32xf32>
    %cst_29 = arith.constant 1.000000e+00 : f32
    %153 = vector.broadcast %cst_29 : f32 to vector<2x32xf32>
    %154 = arith.addf %153, %152 : vector<2x32xf32>
    %155 = arith.divf %153, %154 : vector<2x32xf32>
    %156 = vector.extract_strided_slice %136 {offsets = [0, 64], sizes = [2, 32], strides = [1, 1]} : vector<2x96xf32> to vector<2x32xf32>
    %157 = vector.extract_strided_slice %139 {offsets = [0, 64], sizes = [2, 32], strides = [1, 1]} : vector<2x96xf32> to vector<2x32xf32>
    %158 = arith.mulf %147, %157 : vector<2x32xf32>
    %159 = arith.addf %156, %158 : vector<2x32xf32>
    %160 = math.tanh %159 : vector<2x32xf32>
    %cst_30 = arith.constant 1.000000e+00 : f32
    %161 = vector.broadcast %cst_30 : f32 to vector<2x32xf32>
    %162 = arith.subf %161, %155 : vector<2x32xf32>
    %163 = arith.mulf %162, %160 : vector<2x32xf32>
    %164 = arith.mulf %155, %134 : vector<2x32xf32>
    %165 = arith.addf %163, %164 : vector<2x32xf32>
    %166 = vector.extract_strided_slice %9 {offsets = [0, 5, 0], sizes = [2, 1, 96], strides = [1, 1, 1]} : vector<2x8x96xf32> to vector<2x1x96xf32>
    %167 = vector.shape_cast %166 : vector<2x1x96xf32> to vector<2x96xf32>
    %cst_31 = arith.constant dense<0.000000e+00> : vector<2x96xf32>
    %168 = tpu.matmul %165, %2, %cst_31 {dimension_numbers = #tpu.dot_dimension_numbers<[1], [0], [0], [1], [0, 0, 1, 1], [], []>} : vector<2x32xf32>, vector<32x96xf32>, vector<2x96xf32> -> vector<2x96xf32>
    %169 = vector.broadcast %4 : vector<1x96xf32> to vector<2x96xf32>
    %170 = arith.addf %168, %169 : vector<2x96xf32>
    %171 = vector.extract_strided_slice %167 {offsets = [0, 0], sizes = [2, 32], strides = [1, 1]} : vector<2x96xf32> to vector<2x32xf32>
    %172 = vector.extract_strided_slice %170 {offsets = [0, 0], sizes = [2, 32], strides = [1, 1]} : vector<2x96xf32> to vector<2x32xf32>
    %173 = arith.addf %171, %172 : vector<2x32xf32>
    %174 = arith.negf %173 : vector<2x32xf32>
    %175 = math.exp %174 : vector<2x32xf32>
    %cst_32 = arith.constant 1.000000e+00 : f32
    %176 = vector.broadcast %cst_32 : f32 to vector<2x32xf32>
    %177 = arith.addf %176, %175 : vector<2x32xf32>
    %178 = arith.divf %176, %177 : vector<2x32xf32>
    %179 = vector.extract_strided_slice %167 {offsets = [0, 32], sizes = [2, 32], strides = [1, 1]} : vector<2x96xf32> to vector<2x32xf32>
    %180 = vector.extract_strided_slice %170 {offsets = [0, 32], sizes = [2, 32], strides = [1, 1]} : vector<2x96xf32> to vector<2x32xf32>
    %181 = arith.addf %179, %180 : vector<2x32xf32>
    %182 = arith.negf %181 : vector<2x32xf32>
    %183 = math.exp %182 : vector<2x32xf32>
    %cst_33 = arith.constant 1.000000e+00 : f32
    %184 = vector.broadcast %cst_33 : f32 to vector<2x32xf32>
    %185 = arith.addf %184, %183 : vector<2x32xf32>
    %186 = arith.divf %184, %185 : vector<2x32xf32>
    %187 = vector.extract_strided_slice %167 {offsets = [0, 64], sizes = [2, 32], strides = [1, 1]} : vector<2x96xf32> to vector<2x32xf32>
    %188 = vector.extract_strided_slice %170 {offsets = [0, 64], sizes = [2, 32], strides = [1, 1]} : vector<2x96xf32> to vector<2x32xf32>
    %189 = arith.mulf %178, %188 : vector<2x32xf32>
    %190 = arith.addf %187, %189 : vector<2x32xf32>
    %191 = math.tanh %190 : vector<2x32xf32>
    %cst_34 = arith.constant 1.000000e+00 : f32
    %192 = vector.broadcast %cst_34 : f32 to vector<2x32xf32>
    %193 = arith.subf %192, %186 : vector<2x32xf32>
    %194 = arith.mulf %193, %191 : vector<2x32xf32>
    %195 = arith.mulf %186, %165 : vector<2x32xf32>
    %196 = arith.addf %194, %195 : vector<2x32xf32>
    %197 = vector.extract_strided_slice %9 {offsets = [0, 6, 0], sizes = [2, 1, 96], strides = [1, 1, 1]} : vector<2x8x96xf32> to vector<2x1x96xf32>
    %198 = vector.shape_cast %197 : vector<2x1x96xf32> to vector<2x96xf32>
    %cst_35 = arith.constant dense<0.000000e+00> : vector<2x96xf32>
    %199 = tpu.matmul %196, %2, %cst_35 {dimension_numbers = #tpu.dot_dimension_numbers<[1], [0], [0], [1], [0, 0, 1, 1], [], []>} : vector<2x32xf32>, vector<32x96xf32>, vector<2x96xf32> -> vector<2x96xf32>
    %200 = vector.broadcast %4 : vector<1x96xf32> to vector<2x96xf32>
    %201 = arith.addf %199, %200 : vector<2x96xf32>
    %202 = vector.extract_strided_slice %198 {offsets = [0, 0], sizes = [2, 32], strides = [1, 1]} : vector<2x96xf32> to vector<2x32xf32>
    %203 = vector.extract_strided_slice %201 {offsets = [0, 0], sizes = [2, 32], strides = [1, 1]} : vector<2x96xf32> to vector<2x32xf32>
    %204 = arith.addf %202, %203 : vector<2x32xf32>
    %205 = arith.negf %204 : vector<2x32xf32>
    %206 = math.exp %205 : vector<2x32xf32>
    %cst_36 = arith.constant 1.000000e+00 : f32
    %207 = vector.broadcast %cst_36 : f32 to vector<2x32xf32>
    %208 = arith.addf %207, %206 : vector<2x32xf32>
    %209 = arith.divf %207, %208 : vector<2x32xf32>
    %210 = vector.extract_strided_slice %198 {offsets = [0, 32], sizes = [2, 32], strides = [1, 1]} : vector<2x96xf32> to vector<2x32xf32>
    %211 = vector.extract_strided_slice %201 {offsets = [0, 32], sizes = [2, 32], strides = [1, 1]} : vector<2x96xf32> to vector<2x32xf32>
    %212 = arith.addf %210, %211 : vector<2x32xf32>
    %213 = arith.negf %212 : vector<2x32xf32>
    %214 = math.exp %213 : vector<2x32xf32>
    %cst_37 = arith.constant 1.000000e+00 : f32
    %215 = vector.broadcast %cst_37 : f32 to vector<2x32xf32>
    %216 = arith.addf %215, %214 : vector<2x32xf32>
    %217 = arith.divf %215, %216 : vector<2x32xf32>
    %218 = vector.extract_strided_slice %198 {offsets = [0, 64], sizes = [2, 32], strides = [1, 1]} : vector<2x96xf32> to vector<2x32xf32>
    %219 = vector.extract_strided_slice %201 {offsets = [0, 64], sizes = [2, 32], strides = [1, 1]} : vector<2x96xf32> to vector<2x32xf32>
    %220 = arith.mulf %209, %219 : vector<2x32xf32>
    %221 = arith.addf %218, %220 : vector<2x32xf32>
    %222 = math.tanh %221 : vector<2x32xf32>
    %cst_38 = arith.constant 1.000000e+00 : f32
    %223 = vector.broadcast %cst_38 : f32 to vector<2x32xf32>
    %224 = arith.subf %223, %217 : vector<2x32xf32>
    %225 = arith.mulf %224, %222 : vector<2x32xf32>
    %226 = arith.mulf %217, %196 : vector<2x32xf32>
    %227 = arith.addf %225, %226 : vector<2x32xf32>
    %228 = vector.extract_strided_slice %9 {offsets = [0, 7, 0], sizes = [2, 1, 96], strides = [1, 1, 1]} : vector<2x8x96xf32> to vector<2x1x96xf32>
    %229 = vector.shape_cast %228 : vector<2x1x96xf32> to vector<2x96xf32>
    %cst_39 = arith.constant dense<0.000000e+00> : vector<2x96xf32>
    %230 = tpu.matmul %227, %2, %cst_39 {dimension_numbers = #tpu.dot_dimension_numbers<[1], [0], [0], [1], [0, 0, 1, 1], [], []>} : vector<2x32xf32>, vector<32x96xf32>, vector<2x96xf32> -> vector<2x96xf32>
    %231 = vector.broadcast %4 : vector<1x96xf32> to vector<2x96xf32>
    %232 = arith.addf %230, %231 : vector<2x96xf32>
    %233 = vector.extract_strided_slice %229 {offsets = [0, 0], sizes = [2, 32], strides = [1, 1]} : vector<2x96xf32> to vector<2x32xf32>
    %234 = vector.extract_strided_slice %232 {offsets = [0, 0], sizes = [2, 32], strides = [1, 1]} : vector<2x96xf32> to vector<2x32xf32>
    %235 = arith.addf %233, %234 : vector<2x32xf32>
    %236 = arith.negf %235 : vector<2x32xf32>
    %237 = math.exp %236 : vector<2x32xf32>
    %cst_40 = arith.constant 1.000000e+00 : f32
    %238 = vector.broadcast %cst_40 : f32 to vector<2x32xf32>
    %239 = arith.addf %238, %237 : vector<2x32xf32>
    %240 = arith.divf %238, %239 : vector<2x32xf32>
    %241 = vector.extract_strided_slice %229 {offsets = [0, 32], sizes = [2, 32], strides = [1, 1]} : vector<2x96xf32> to vector<2x32xf32>
    %242 = vector.extract_strided_slice %232 {offsets = [0, 32], sizes = [2, 32], strides = [1, 1]} : vector<2x96xf32> to vector<2x32xf32>
    %243 = arith.addf %241, %242 : vector<2x32xf32>
    %244 = arith.negf %243 : vector<2x32xf32>
    %245 = math.exp %244 : vector<2x32xf32>
    %cst_41 = arith.constant 1.000000e+00 : f32
    %246 = vector.broadcast %cst_41 : f32 to vector<2x32xf32>
    %247 = arith.addf %246, %245 : vector<2x32xf32>
    %248 = arith.divf %246, %247 : vector<2x32xf32>
    %249 = vector.extract_strided_slice %229 {offsets = [0, 64], sizes = [2, 32], strides = [1, 1]} : vector<2x96xf32> to vector<2x32xf32>
    %250 = vector.extract_strided_slice %232 {offsets = [0, 64], sizes = [2, 32], strides = [1, 1]} : vector<2x96xf32> to vector<2x32xf32>
    %251 = arith.mulf %240, %250 : vector<2x32xf32>
    %252 = arith.addf %249, %251 : vector<2x32xf32>
    %253 = math.tanh %252 : vector<2x32xf32>
    %cst_42 = arith.constant 1.000000e+00 : f32
    %254 = vector.broadcast %cst_42 : f32 to vector<2x32xf32>
    %255 = arith.subf %254, %248 : vector<2x32xf32>
    %256 = arith.mulf %255, %253 : vector<2x32xf32>
    %257 = arith.mulf %248, %227 : vector<2x32xf32>
    %258 = arith.addf %256, %257 : vector<2x32xf32>
    %259 = vector.shape_cast %41 : vector<2x32xf32> to vector<2x1x32xf32>
    %260 = vector.shape_cast %72 : vector<2x32xf32> to vector<2x1x32xf32>
    %261 = vector.shape_cast %103 : vector<2x32xf32> to vector<2x1x32xf32>
    %262 = vector.shape_cast %134 : vector<2x32xf32> to vector<2x1x32xf32>
    %263 = vector.shape_cast %165 : vector<2x32xf32> to vector<2x1x32xf32>
    %264 = vector.shape_cast %196 : vector<2x32xf32> to vector<2x1x32xf32>
    %265 = vector.shape_cast %227 : vector<2x32xf32> to vector<2x1x32xf32>
    %266 = vector.shape_cast %258 : vector<2x32xf32> to vector<2x1x32xf32>
    %267 = tpu.concatenate %259, %260, %261, %262, %263, %264, %265, %266 in 1 : vector<2x1x32xf32>, vector<2x1x32xf32>, vector<2x1x32xf32>, vector<2x1x32xf32>, vector<2x1x32xf32>, vector<2x1x32xf32>, vector<2x1x32xf32>, vector<2x1x32xf32> -> vector<2x8x32xf32>
    %c0_43 = arith.constant 0 : index
    %c0_44 = arith.constant 0 : index
    %c0_45 = arith.constant 0 : index
    %268 = vector.load %arg2[%c0_43, %c0_44, %c0_45] : memref<2x4x32xf32, #tpu.memory_space<vmem>>, vector<2x4x32xf32>
    %c0_46 = arith.constant 0 : index
    %c0_47 = arith.constant 0 : index
    %269 = vector.load %arg7[%c0_46, %c0_47] : memref<32x96xf32, #tpu.memory_space<vmem>>, vector<32x96xf32>
    %c0_48 = arith.constant 0 : index
    %c0_49 = arith.constant 0 : index
    %270 = vector.load %arg8[%c0_48, %c0_49] : memref<32x96xf32, #tpu.memory_space<vmem>>, vector<32x96xf32>
    %c0_50 = arith.constant 0 : index
    %c0_51 = arith.constant 0 : index
    %271 = vector.load %arg9[%c0_50, %c0_51] : memref<1x96xf32, #tpu.memory_space<vmem>>, vector<1x96xf32>
    %c0_52 = arith.constant 0 : index
    %c0_53 = arith.constant 0 : index
    %272 = vector.load %arg10[%c0_52, %c0_53] : memref<1x96xf32, #tpu.memory_space<vmem>>, vector<1x96xf32>
    %273 = vector.shape_cast %268 : vector<2x4x32xf32> to vector<8x32xf32>
    %cst_54 = arith.constant dense<0.000000e+00> : vector<8x96xf32>
    %274 = tpu.matmul %273, %269, %cst_54 {dimension_numbers = #tpu.dot_dimension_numbers<[1], [0], [0], [1], [0, 0, 1, 1], [], []>} : vector<8x32xf32>, vector<32x96xf32>, vector<8x96xf32> -> vector<8x96xf32>
    %275 = vector.broadcast %271 : vector<1x96xf32> to vector<8x96xf32>
    %276 = arith.addf %274, %275 : vector<8x96xf32>
    %277 = vector.shape_cast %276 : vector<8x96xf32> to vector<2x4x96xf32>
    %cst_55 = arith.constant 0.000000e+00 : f32
    %278 = vector.broadcast %cst_55 : f32 to vector<2x32xf32>
    %279 = vector.extract_strided_slice %277 {offsets = [0, 0, 0], sizes = [2, 1, 96], strides = [1, 1, 1]} : vector<2x4x96xf32> to vector<2x1x96xf32>
    %280 = vector.shape_cast %279 : vector<2x1x96xf32> to vector<2x96xf32>
    %cst_56 = arith.constant dense<0.000000e+00> : vector<2x96xf32>
    %281 = tpu.matmul %278, %270, %cst_56 {dimension_numbers = #tpu.dot_dimension_numbers<[1], [0], [0], [1], [0, 0, 1, 1], [], []>} : vector<2x32xf32>, vector<32x96xf32>, vector<2x96xf32> -> vector<2x96xf32>
    %282 = vector.broadcast %272 : vector<1x96xf32> to vector<2x96xf32>
    %283 = arith.addf %281, %282 : vector<2x96xf32>
    %284 = vector.extract_strided_slice %280 {offsets = [0, 0], sizes = [2, 32], strides = [1, 1]} : vector<2x96xf32> to vector<2x32xf32>
    %285 = vector.extract_strided_slice %283 {offsets = [0, 0], sizes = [2, 32], strides = [1, 1]} : vector<2x96xf32> to vector<2x32xf32>
    %286 = arith.addf %284, %285 : vector<2x32xf32>
    %287 = arith.negf %286 : vector<2x32xf32>
    %288 = math.exp %287 : vector<2x32xf32>
    %cst_57 = arith.constant 1.000000e+00 : f32
    %289 = vector.broadcast %cst_57 : f32 to vector<2x32xf32>
    %290 = arith.addf %289, %288 : vector<2x32xf32>
    %291 = arith.divf %289, %290 : vector<2x32xf32>
    %292 = vector.extract_strided_slice %280 {offsets = [0, 32], sizes = [2, 32], strides = [1, 1]} : vector<2x96xf32> to vector<2x32xf32>
    %293 = vector.extract_strided_slice %283 {offsets = [0, 32], sizes = [2, 32], strides = [1, 1]} : vector<2x96xf32> to vector<2x32xf32>
    %294 = arith.addf %292, %293 : vector<2x32xf32>
    %295 = arith.negf %294 : vector<2x32xf32>
    %296 = math.exp %295 : vector<2x32xf32>
    %cst_58 = arith.constant 1.000000e+00 : f32
    %297 = vector.broadcast %cst_58 : f32 to vector<2x32xf32>
    %298 = arith.addf %297, %296 : vector<2x32xf32>
    %299 = arith.divf %297, %298 : vector<2x32xf32>
    %300 = vector.extract_strided_slice %280 {offsets = [0, 64], sizes = [2, 32], strides = [1, 1]} : vector<2x96xf32> to vector<2x32xf32>
    %301 = vector.extract_strided_slice %283 {offsets = [0, 64], sizes = [2, 32], strides = [1, 1]} : vector<2x96xf32> to vector<2x32xf32>
    %302 = arith.mulf %291, %301 : vector<2x32xf32>
    %303 = arith.addf %300, %302 : vector<2x32xf32>
    %304 = math.tanh %303 : vector<2x32xf32>
    %cst_59 = arith.constant 1.000000e+00 : f32
    %305 = vector.broadcast %cst_59 : f32 to vector<2x32xf32>
    %306 = arith.subf %305, %299 : vector<2x32xf32>
    %307 = arith.mulf %306, %304 : vector<2x32xf32>
    %308 = arith.mulf %299, %278 : vector<2x32xf32>
    %309 = arith.addf %307, %308 : vector<2x32xf32>
    %310 = vector.extract_strided_slice %277 {offsets = [0, 1, 0], sizes = [2, 1, 96], strides = [1, 1, 1]} : vector<2x4x96xf32> to vector<2x1x96xf32>
    %311 = vector.shape_cast %310 : vector<2x1x96xf32> to vector<2x96xf32>
    %cst_60 = arith.constant dense<0.000000e+00> : vector<2x96xf32>
    %312 = tpu.matmul %309, %270, %cst_60 {dimension_numbers = #tpu.dot_dimension_numbers<[1], [0], [0], [1], [0, 0, 1, 1], [], []>} : vector<2x32xf32>, vector<32x96xf32>, vector<2x96xf32> -> vector<2x96xf32>
    %313 = vector.broadcast %272 : vector<1x96xf32> to vector<2x96xf32>
    %314 = arith.addf %312, %313 : vector<2x96xf32>
    %315 = vector.extract_strided_slice %311 {offsets = [0, 0], sizes = [2, 32], strides = [1, 1]} : vector<2x96xf32> to vector<2x32xf32>
    %316 = vector.extract_strided_slice %314 {offsets = [0, 0], sizes = [2, 32], strides = [1, 1]} : vector<2x96xf32> to vector<2x32xf32>
    %317 = arith.addf %315, %316 : vector<2x32xf32>
    %318 = arith.negf %317 : vector<2x32xf32>
    %319 = math.exp %318 : vector<2x32xf32>
    %cst_61 = arith.constant 1.000000e+00 : f32
    %320 = vector.broadcast %cst_61 : f32 to vector<2x32xf32>
    %321 = arith.addf %320, %319 : vector<2x32xf32>
    %322 = arith.divf %320, %321 : vector<2x32xf32>
    %323 = vector.extract_strided_slice %311 {offsets = [0, 32], sizes = [2, 32], strides = [1, 1]} : vector<2x96xf32> to vector<2x32xf32>
    %324 = vector.extract_strided_slice %314 {offsets = [0, 32], sizes = [2, 32], strides = [1, 1]} : vector<2x96xf32> to vector<2x32xf32>
    %325 = arith.addf %323, %324 : vector<2x32xf32>
    %326 = arith.negf %325 : vector<2x32xf32>
    %327 = math.exp %326 : vector<2x32xf32>
    %cst_62 = arith.constant 1.000000e+00 : f32
    %328 = vector.broadcast %cst_62 : f32 to vector<2x32xf32>
    %329 = arith.addf %328, %327 : vector<2x32xf32>
    %330 = arith.divf %328, %329 : vector<2x32xf32>
    %331 = vector.extract_strided_slice %311 {offsets = [0, 64], sizes = [2, 32], strides = [1, 1]} : vector<2x96xf32> to vector<2x32xf32>
    %332 = vector.extract_strided_slice %314 {offsets = [0, 64], sizes = [2, 32], strides = [1, 1]} : vector<2x96xf32> to vector<2x32xf32>
    %333 = arith.mulf %322, %332 : vector<2x32xf32>
    %334 = arith.addf %331, %333 : vector<2x32xf32>
    %335 = math.tanh %334 : vector<2x32xf32>
    %cst_63 = arith.constant 1.000000e+00 : f32
    %336 = vector.broadcast %cst_63 : f32 to vector<2x32xf32>
    %337 = arith.subf %336, %330 : vector<2x32xf32>
    %338 = arith.mulf %337, %335 : vector<2x32xf32>
    %339 = arith.mulf %330, %309 : vector<2x32xf32>
    %340 = arith.addf %338, %339 : vector<2x32xf32>
    %341 = vector.extract_strided_slice %277 {offsets = [0, 2, 0], sizes = [2, 1, 96], strides = [1, 1, 1]} : vector<2x4x96xf32> to vector<2x1x96xf32>
    %342 = vector.shape_cast %341 : vector<2x1x96xf32> to vector<2x96xf32>
    %cst_64 = arith.constant dense<0.000000e+00> : vector<2x96xf32>
    %343 = tpu.matmul %340, %270, %cst_64 {dimension_numbers = #tpu.dot_dimension_numbers<[1], [0], [0], [1], [0, 0, 1, 1], [], []>} : vector<2x32xf32>, vector<32x96xf32>, vector<2x96xf32> -> vector<2x96xf32>
    %344 = vector.broadcast %272 : vector<1x96xf32> to vector<2x96xf32>
    %345 = arith.addf %343, %344 : vector<2x96xf32>
    %346 = vector.extract_strided_slice %342 {offsets = [0, 0], sizes = [2, 32], strides = [1, 1]} : vector<2x96xf32> to vector<2x32xf32>
    %347 = vector.extract_strided_slice %345 {offsets = [0, 0], sizes = [2, 32], strides = [1, 1]} : vector<2x96xf32> to vector<2x32xf32>
    %348 = arith.addf %346, %347 : vector<2x32xf32>
    %349 = arith.negf %348 : vector<2x32xf32>
    %350 = math.exp %349 : vector<2x32xf32>
    %cst_65 = arith.constant 1.000000e+00 : f32
    %351 = vector.broadcast %cst_65 : f32 to vector<2x32xf32>
    %352 = arith.addf %351, %350 : vector<2x32xf32>
    %353 = arith.divf %351, %352 : vector<2x32xf32>
    %354 = vector.extract_strided_slice %342 {offsets = [0, 32], sizes = [2, 32], strides = [1, 1]} : vector<2x96xf32> to vector<2x32xf32>
    %355 = vector.extract_strided_slice %345 {offsets = [0, 32], sizes = [2, 32], strides = [1, 1]} : vector<2x96xf32> to vector<2x32xf32>
    %356 = arith.addf %354, %355 : vector<2x32xf32>
    %357 = arith.negf %356 : vector<2x32xf32>
    %358 = math.exp %357 : vector<2x32xf32>
    %cst_66 = arith.constant 1.000000e+00 : f32
    %359 = vector.broadcast %cst_66 : f32 to vector<2x32xf32>
    %360 = arith.addf %359, %358 : vector<2x32xf32>
    %361 = arith.divf %359, %360 : vector<2x32xf32>
    %362 = vector.extract_strided_slice %342 {offsets = [0, 64], sizes = [2, 32], strides = [1, 1]} : vector<2x96xf32> to vector<2x32xf32>
    %363 = vector.extract_strided_slice %345 {offsets = [0, 64], sizes = [2, 32], strides = [1, 1]} : vector<2x96xf32> to vector<2x32xf32>
    %364 = arith.mulf %353, %363 : vector<2x32xf32>
    %365 = arith.addf %362, %364 : vector<2x32xf32>
    %366 = math.tanh %365 : vector<2x32xf32>
    %cst_67 = arith.constant 1.000000e+00 : f32
    %367 = vector.broadcast %cst_67 : f32 to vector<2x32xf32>
    %368 = arith.subf %367, %361 : vector<2x32xf32>
    %369 = arith.mulf %368, %366 : vector<2x32xf32>
    %370 = arith.mulf %361, %340 : vector<2x32xf32>
    %371 = arith.addf %369, %370 : vector<2x32xf32>
    %372 = vector.extract_strided_slice %277 {offsets = [0, 3, 0], sizes = [2, 1, 96], strides = [1, 1, 1]} : vector<2x4x96xf32> to vector<2x1x96xf32>
    %373 = vector.shape_cast %372 : vector<2x1x96xf32> to vector<2x96xf32>
    %cst_68 = arith.constant dense<0.000000e+00> : vector<2x96xf32>
    %374 = tpu.matmul %371, %270, %cst_68 {dimension_numbers = #tpu.dot_dimension_numbers<[1], [0], [0], [1], [0, 0, 1, 1], [], []>} : vector<2x32xf32>, vector<32x96xf32>, vector<2x96xf32> -> vector<2x96xf32>
    %375 = vector.broadcast %272 : vector<1x96xf32> to vector<2x96xf32>
    %376 = arith.addf %374, %375 : vector<2x96xf32>
    %377 = vector.extract_strided_slice %373 {offsets = [0, 0], sizes = [2, 32], strides = [1, 1]} : vector<2x96xf32> to vector<2x32xf32>
    %378 = vector.extract_strided_slice %376 {offsets = [0, 0], sizes = [2, 32], strides = [1, 1]} : vector<2x96xf32> to vector<2x32xf32>
    %379 = arith.addf %377, %378 : vector<2x32xf32>
    %380 = arith.negf %379 : vector<2x32xf32>
    %381 = math.exp %380 : vector<2x32xf32>
    %cst_69 = arith.constant 1.000000e+00 : f32
    %382 = vector.broadcast %cst_69 : f32 to vector<2x32xf32>
    %383 = arith.addf %382, %381 : vector<2x32xf32>
    %384 = arith.divf %382, %383 : vector<2x32xf32>
    %385 = vector.extract_strided_slice %373 {offsets = [0, 32], sizes = [2, 32], strides = [1, 1]} : vector<2x96xf32> to vector<2x32xf32>
    %386 = vector.extract_strided_slice %376 {offsets = [0, 32], sizes = [2, 32], strides = [1, 1]} : vector<2x96xf32> to vector<2x32xf32>
    %387 = arith.addf %385, %386 : vector<2x32xf32>
    %388 = arith.negf %387 : vector<2x32xf32>
    %389 = math.exp %388 : vector<2x32xf32>
    %cst_70 = arith.constant 1.000000e+00 : f32
    %390 = vector.broadcast %cst_70 : f32 to vector<2x32xf32>
    %391 = arith.addf %390, %389 : vector<2x32xf32>
    %392 = arith.divf %390, %391 : vector<2x32xf32>
    %393 = vector.extract_strided_slice %373 {offsets = [0, 64], sizes = [2, 32], strides = [1, 1]} : vector<2x96xf32> to vector<2x32xf32>
    %394 = vector.extract_strided_slice %376 {offsets = [0, 64], sizes = [2, 32], strides = [1, 1]} : vector<2x96xf32> to vector<2x32xf32>
    %395 = arith.mulf %384, %394 : vector<2x32xf32>
    %396 = arith.addf %393, %395 : vector<2x32xf32>
    %397 = math.tanh %396 : vector<2x32xf32>
    %cst_71 = arith.constant 1.000000e+00 : f32
    %398 = vector.broadcast %cst_71 : f32 to vector<2x32xf32>
    %399 = arith.subf %398, %392 : vector<2x32xf32>
    %400 = arith.mulf %399, %397 : vector<2x32xf32>
    %401 = arith.mulf %392, %371 : vector<2x32xf32>
    %402 = arith.addf %400, %401 : vector<2x32xf32>
    %403 = vector.shape_cast %309 : vector<2x32xf32> to vector<2x1x32xf32>
    %404 = vector.shape_cast %340 : vector<2x32xf32> to vector<2x1x32xf32>
    %405 = vector.shape_cast %371 : vector<2x32xf32> to vector<2x1x32xf32>
    %406 = vector.shape_cast %402 : vector<2x32xf32> to vector<2x1x32xf32>
    %407 = tpu.concatenate %403, %404, %405, %406 in 1 : vector<2x1x32xf32>, vector<2x1x32xf32>, vector<2x1x32xf32>, vector<2x1x32xf32> -> vector<2x4x32xf32>
    %408 = vector.shape_cast %267 : vector<2x8x32xf32> to vector<16x32xf32>
    %c0_72 = arith.constant 0 : index
    %c0_73 = arith.constant 0 : index
    %409 = vector.load %arg11[%c0_72, %c0_73] : memref<32x32xf32, #tpu.memory_space<vmem>>, vector<32x32xf32>
    %cst_74 = arith.constant dense<0.000000e+00> : vector<16x32xf32>
    %410 = tpu.matmul %408, %409, %cst_74 {dimension_numbers = #tpu.dot_dimension_numbers<[1], [0], [0], [1], [0, 0, 1, 1], [], []>} : vector<16x32xf32>, vector<32x32xf32>, vector<16x32xf32> -> vector<16x32xf32>
    %411 = vector.shape_cast %410 : vector<16x32xf32> to vector<2x8x32xf32>
    "tpu.trace_start"() <{level = 10 : i32, message = "bqh,bkh->bqk"}> : () -> ()
    %cst_75 = arith.constant dense<0.000000e+00> : vector<2x4x8xf32>
    %412 = tpu.matmul %407, %411, %cst_75 {dimension_numbers = #tpu.dot_dimension_numbers<[2], [2], [1], [1], [0, 0, 0, 1, 1, 1], [0], [0]>} : vector<2x4x32xf32>, vector<2x8x32xf32>, vector<2x4x8xf32> -> vector<2x4x8xf32>
    "tpu.trace_stop"() : () -> ()
    %cst_76 = arith.constant dense<0xFF800000> : vector<2x4xf32>
    %413 = vector.multi_reduction <maximumf>, %412, %cst_76 [2] : vector<2x4x8xf32> to vector<2x4xf32>
    %414 = vector.shape_cast %413 : vector<2x4xf32> to vector<2x4x1xf32>
    %415 = vector.broadcast %414 : vector<2x4x1xf32> to vector<2x4x8xf32>
    %416 = arith.subf %412, %415 : vector<2x4x8xf32>
    %417 = math.exp %416 : vector<2x4x8xf32>
    %cst_77 = arith.constant dense<0.000000e+00> : vector<2x4xf32>
    %418 = vector.multi_reduction <add>, %417, %cst_77 [2] : vector<2x4x8xf32> to vector<2x4xf32>
    %419 = vector.shape_cast %418 : vector<2x4xf32> to vector<2x4x1xf32>
    %420 = tpu.reciprocal %419 {approx = true} : vector<2x4x1xf32> -> vector<2x4x1xf32>
    %421 = vector.broadcast %420 : vector<2x4x1xf32> to vector<2x4x8xf32>
    %422 = arith.mulf %417, %421 : vector<2x4x8xf32>
    "tpu.trace_start"() <{level = 10 : i32, message = "bqk,bkh->bqh"}> : () -> ()
    %cst_78 = arith.constant dense<0.000000e+00> : vector<2x4x32xf32>
    %423 = tpu.matmul %422, %267, %cst_78 {dimension_numbers = #tpu.dot_dimension_numbers<[2], [1], [1], [2], [0, 0, 0, 1, 1, 2], [0], [0]>} : vector<2x4x8xf32>, vector<2x8x32xf32>, vector<2x4x32xf32> -> vector<2x4x32xf32>
    "tpu.trace_stop"() : () -> ()
    %424 = tpu.concatenate %407, %423 in 2 : vector<2x4x32xf32>, vector<2x4x32xf32> -> vector<2x4x64xf32>
    %425 = vector.shape_cast %424 : vector<2x4x64xf32> to vector<8x64xf32>
    %c0_79 = arith.constant 0 : index
    %c0_80 = arith.constant 0 : index
    %426 = vector.load %arg12[%c0_79, %c0_80] : memref<64x128xf32, #tpu.memory_space<vmem>>, vector<64x128xf32>
    %cst_81 = arith.constant dense<0.000000e+00> : vector<8x128xf32>
    %427 = tpu.matmul %425, %426, %cst_81 {dimension_numbers = #tpu.dot_dimension_numbers<[1], [0], [0], [1], [0, 0, 1, 1], [], []>} : vector<8x64xf32>, vector<64x128xf32>, vector<8x128xf32> -> vector<8x128xf32>
    %428 = tpu.iota {dimensions = array<i32: 1>} : vector<8x128xi32>
    %c64_i32 = arith.constant 64 : i32
    %429 = vector.broadcast %c64_i32 : i32 to vector<8x128xi32>
    %430 = arith.cmpi slt, %428, %429 : vector<8x128xi32>
    %cst_82 = arith.constant -1.000000e+30 : f32
    %431 = vector.broadcast %cst_82 : f32 to vector<8x128xf32>
    %432 = arith.select %430, %427, %431 : vector<8x128xi1>, vector<8x128xf32>
    %cst_83 = arith.constant dense<0xFF800000> : vector<8xf32>
    %433 = vector.multi_reduction <maximumf>, %432, %cst_83 [1] : vector<8x128xf32> to vector<8xf32>
    %434 = vector.shape_cast %433 : vector<8xf32> to vector<8x1xf32>
    %435 = vector.broadcast %434 : vector<8x1xf32> to vector<8x128xf32>
    %436 = arith.subf %432, %435 : vector<8x128xf32>
    %437 = math.exp %436 : vector<8x128xf32>
    %cst_84 = arith.constant dense<0.000000e+00> : vector<8xf32>
    %438 = vector.multi_reduction <add>, %437, %cst_84 [1] : vector<8x128xf32> to vector<8xf32>
    %439 = vector.shape_cast %438 : vector<8xf32> to vector<8x1xf32>
    %440 = math.log %439 : vector<8x1xf32>
    %441 = vector.broadcast %440 : vector<8x1xf32> to vector<8x128xf32>
    %442 = arith.subf %436, %441 : vector<8x128xf32>
    %c0_85 = arith.constant 0 : index
    %c0_86 = arith.constant 0 : index
    %443 = vector.load %arg13[%c0_85, %c0_86] : memref<8x128xf32, #tpu.memory_space<vmem>>, vector<8x128xf32>
    tpu.vector_store %arg13[%c0_85, %c0_86], %442 {strides = array<i32>} : memref<8x128xf32, #tpu.memory_space<vmem>>, vector<8x128xf32>,
    return
  }
  func.func @transform_0(%arg0: i32) -> (i32, i32, i32) {
    %c0_i32 = arith.constant 0 : i32
    %c0_i32_0 = arith.constant 0 : i32
    %c0_i32_1 = arith.constant 0 : i32
    %c0_i32_2 = arith.constant 0 : i32
    return %c0_i32, %c0_i32_0, %c0_i32_1 : i32, i32, i32
  }
  func.func @transform_1(%arg0: i32) -> (i32, i32, i32) {
    %c0_i32 = arith.constant 0 : i32
    %c0_i32_0 = arith.constant 0 : i32
    %c0_i32_1 = arith.constant 0 : i32
    %c0_i32_2 = arith.constant 0 : i32
    return %c0_i32, %c0_i32_0, %c0_i32_1 : i32, i32, i32
  }
  func.func @transform_2(%arg0: i32) -> (i32, i32) {
    %c0_i32 = arith.constant 0 : i32
    %c0_i32_0 = arith.constant 0 : i32
    %c0_i32_1 = arith.constant 0 : i32
    return %c0_i32, %c0_i32_0 : i32, i32
  }
  func.func @transform_3(%arg0: i32) -> (i32, i32) {
    %c0_i32 = arith.constant 0 : i32
    %c0_i32_0 = arith.constant 0 : i32
    %c0_i32_1 = arith.constant 0 : i32
    return %c0_i32, %c0_i32_0 : i32, i32
  }
  func.func @transform_4(%arg0: i32) -> (i32, i32) {
    %c0_i32 = arith.constant 0 : i32
    %c0_i32_0 = arith.constant 0 : i32
    %c0_i32_1 = arith.constant 0 : i32
    return %c0_i32, %c0_i32_0 : i32, i32
  }
  func.func @transform_5(%arg0: i32) -> (i32, i32) {
    %c0_i32 = arith.constant 0 : i32
    %c0_i32_0 = arith.constant 0 : i32
    %c0_i32_1 = arith.constant 0 : i32
    return %c0_i32, %c0_i32_0 : i32, i32
  }
  func.func @transform_6(%arg0: i32) -> (i32, i32) {
    %c0_i32 = arith.constant 0 : i32
    %c0_i32_0 = arith.constant 0 : i32
    %c0_i32_1 = arith.constant 0 : i32
    return %c0_i32, %c0_i32_0 : i32, i32
  }
  func.func @transform_7(%arg0: i32) -> (i32, i32) {
    %c0_i32 = arith.constant 0 : i32
    %c0_i32_0 = arith.constant 0 : i32
    %c0_i32_1 = arith.constant 0 : i32
    return %c0_i32, %c0_i32_0 : i32, i32
  }
  func.func @transform_8(%arg0: i32) -> (i32, i32) {
    %c0_i32 = arith.constant 0 : i32
    %c0_i32_0 = arith.constant 0 : i32
    %c0_i32_1 = arith.constant 0 : i32
    return %c0_i32, %c0_i32_0 : i32, i32
  }
  func.func @transform_9(%arg0: i32) -> (i32, i32) {
    %c0_i32 = arith.constant 0 : i32
    %c0_i32_0 = arith.constant 0 : i32
    %c0_i32_1 = arith.constant 0 : i32
    return %c0_i32, %c0_i32_0 : i32, i32
  }
  func.func @transform_10(%arg0: i32) -> (i32, i32) {
    %c0_i32 = arith.constant 0 : i32
    %c0_i32_0 = arith.constant 0 : i32
    %c0_i32_1 = arith.constant 0 : i32
    return %c0_i32, %c0_i32_0 : i32, i32
  }
  func.func @transform_11(%arg0: i32) -> (i32, i32) {
    %c0_i32 = arith.constant 0 : i32
    %c0_i32_0 = arith.constant 0 : i32
    %c0_i32_1 = arith.constant 0 : i32
    return %c0_i32, %c0_i32_0 : i32, i32
  }
  func.func @transform_12(%arg0: i32) -> (i32, i32) {
    %c0_i32 = arith.constant 0 : i32
    %c0_i32_0 = arith.constant 0 : i32
    %c0_i32_1 = arith.constant 0 : i32
    return %c0_i32, %c0_i32_0 : i32, i32
  }
}

</mosaic_0001>

<bundles_post_ra>
// kernel: traj_pre_local_attn_long_forward.1
= control target key start
LH: loop header
LB: loop body
LE: loop exit
PB: predicated region body
PF: predicated region fallthrough
CT: control target
= control target key end

     0   :  { %vm60_vm0 = vcmask 261120   ;;  %v2998_v3 = vmov 0.0   ;;  %s3692_s0 = inlined_call_operand.vmem [shape: f32[2,8,32], index: 0, kind: input, shape index: {}]   ;;  %s3693_s1 = inlined_call_operand.vmem [shape: f32[2,4,32], index: 1, kind: input, shape index: {}]   ;;  %s3694_s2 = inlined_call_operand.vmem [shape: f32[32,96], index: 2, kind: input, shape index: {}]   ;;  %s3695_s3 = inlined_call_operand.vmem [shape: f32[32,96], index: 3, kind: input, shape index: {}]   ;;  %s3696_s4 = inlined_call_operand.vmem [shape: f32[1,96], index: 4, kind: input, shape index: {}]   ;;  %s3697_s5 = inlined_call_operand.vmem [shape: f32[1,96], index: 5, kind: input, shape index: {}]   ;;  %s3698_s6 = inlined_call_operand.vmem [shape: f32[32,96], index: 6, kind: input, shape index: {}]   ;;  %s3699_s7 = inlined_call_operand.vmem [shape: f32[32,96], index: 7, kind: input, shape index: {}]   ;;  %s3700_s8 = inlined_call_operand.vmem [shape: f32[1,96], index: 8, kind: input, shape index: {}]   ;;  %s3701_s9 = inlined_call_operand.vmem [shape: f32[1,96], index: 9, kind: input, shape index: {}]   ;;  %s3702_s10 = inlined_call_operand.vmem [shape: f32[32,32], index: 10, kind: input, shape index: {}]   ;;  %s3703_s11 = inlined_call_operand.vmem [shape: f32[64,128], index: 11, kind: input, shape index: {}]   ;;  %s3704_s12 = inlined_call_operand.hbm [shape: f32[8,128], index: 12, kind: output, shape index: {}]  }
   0x1   :  { %v47_v0 = vld [vmem:[%s3694_s2 + $0x18] sm:$0xff]  ;;  %v46_v1 = vld [vmem:[%s3694_s2 + $0x10] sm:$0xff]  ;;  %v42_v2 = vld [vmem:[%s3692_s0] sm:$0xff]  ;;  %2630 = vmatprep.subr.mxu0 %v2998_v3 }
   0x2   :  { %2608 = vmatprep.subr.mxu1 %v47_v0  ;;  %v45_v4 = vld [vmem:[%s3694_s2 + $0x8] sm:$0xff]  ;;  %2616 = vmatprep.mubr.msk.f32.mxu1 %vm60_vm0, %v42_v2  ;;  %v3086_v5 = vld [vmem:[%s3695_s3 + $0x18] sm:$0xff]  ;;  %v44_v6 = vld [vmem:[%s3694_s2] sm:$0xff] }
   0x3   :  { %2609 = vmatpush3.msra.mxu1 %v47_v0  ;;  %2631 = vmatpush3.msra.mxu0 %v3086_v5  ;;  %v3095_v7 = vld [vmem:[%s3695_s3 + $0x10] sm:$0xff] }
   0x4   :  { %2610 = vmatprep.subr.mxu1 %v46_v1  ;;  %2632 = vmatprep.subr.mxu0 %v2998_v3 }
   0x5   :  { %2611 = vmatpush3.msra.mxu1 %v46_v1 }
   0x6   :  { %17 = vsyncpa [#allocation3], 0  ;;  %2612 = vmatprep.subr.mxu1 %v45_v4  ;;  %2633 = vmatpush3.msra.mxu0 %v3095_v7  ;;  %v43_v8 = vld [vmem:[%s3692_s0 + $0x8] sm:$0xff]  ;;  %v3116_v10 = vld [vmem:[%s3695_s3] sm:$0xff]  ;;  %vm2999_vm1 = vmmov 0   ;;  %s3000_s22 = smov 64  }
   0x7   :  { %2613 = vmatpush3.msra.mxu1 %v45_v4  ;;  %v3105_v9 = vld [vmem:[%s3695_s3 + $0x8] sm:$0xff]  ;;  %2634 = vmatprep.subr.mxu0 %v2998_v3  ;;  %v3145_v13 = vld [vmem:[%s3697_s5] ss:$0 sm:$0xff]  ;;  %vm278_vm2 = vcmask 1041409   ;;  %vm1238_vm3 = vcmask 1040384   ;;  %vm1241_vm4 = vcmask 1041408  }
   0x8   :  { %2614 = vmatprep.subr.mxu1 %v44_v6  ;;  %2635 = vmatpush3.msra.mxu0 %v3105_v9  ;;  %v2464_v18 = vld [vmem:[%s3696_s4] ss:$0 sm:$0xff]  ;;  %s3001_s4 = smov 96   ;;  %vm1244_vm5 = vcmask 1042432   ;;  %vm1247_vm6 = vcmask 1043456   ;;  %vm1250_vm7 = vcmask 1044480  }
   0x9   :  { %2615 = vmatpush3.msra.mxu1 %v44_v6  ;;  %2636 = vmatprep.subr.mxu0 %v2998_v3  ;;  %vm1253_vm8 = vcmask 1045504   ;;  %vm1256_vm9 = vcmask 1046528   ;;  %vm2167_vm10 = vcmask 60416   ;;  %vm2191_vm11 = vcmask 64512   ;;  %s3002_s20 = smov 32  }
   0xa   :  { %2617 = vmatmul.mubr.msk.f32.vlgmr.msra.gmra.mxu1 %vm60_vm0, %v43_v8  ;;  %2619 = vmatprep.subr.mxu1 %v2998_v3  ;;  %vm2362_vm12 = vcmask 523264  }
   0xb   :  { %2620 = vmatpush3.msra.mxu1 %v3086_v5  ;;  %2627 = vmatprep.mubr.msk.f32.mxu1 %vm2999_vm1, %v2998_v3 }
   0xc   :  { %2621 = vmatprep.subr.mxu1 %v2998_v3  ;;  %2637 = vmatpush3.msra.mxu0 %v3116_v10 }
   0xd   :  { %2622 = vmatpush3.msra.mxu1 %v3095_v7  ;;  %2638 = vmatprep.mubr.msk.f32.mxu0 %vm2999_vm1, %v2998_v3 }
   0xe   :  { %2623 = vmatprep.subr.mxu1 %v2998_v3  ;;  %2652 = vmatprep.subr.mxu0 %v2998_v3 }
   0xf   :  { %2624 = vmatpush3.msra.mxu1 %v3105_v9 }
  0x10   :  { %2625 = vmatprep.subr.mxu1 %v2998_v3 }
  0x11   :  { %2626 = vmatpush3.msra.mxu1 %v3116_v10 }
  0x12   :  { %2628 = vmatmul.mubr.f32.vlgmr.msra.gmra.mxu1 %v2998_v3  ;;  %2641 = vmatprep.subr.mxu1 %v2998_v3 }
  0x13   :  { %2642 = vmatpush3.msra.mxu1 %v3086_v5  ;;  %2649 = vmatprep.mubr.msk.f32.mxu1 %vm2999_vm1, %v2998_v3 }
  0x14   :  { %2643 = vmatprep.subr.mxu1 %v2998_v3 }
  0x15   :  { %2644 = vmatpush3.msra.mxu1 %v3095_v7 }
  0x16   :  { %2645 = vmatprep.subr.mxu1 %v2998_v3 }
  0x17   :  { %2646 = vmatpush3.msra.mxu1 %v3105_v9 }
  0x18   :  { %2647 = vmatprep.subr.mxu1 %v2998_v3 }
  0x19   :  { %2648 = vmatpush3.msra.mxu1 %v3116_v10 }
  0x1a   :  { %2663 = vmatprep.subr.mxu1 %v2998_v3 }
  0xca   :  { %v2618_v11 = vpop.f32.mrf.mxu1 }
  0xcb   :  { %v3153_v19 = vadd.f32 %v2618_v11, %v2464_v18 }
  0xcc   :  { %v133_v12 = vpop.f32.mrf.mxu1 }
  0xcd   :  { %v3156_v21 = vadd.f32 %v2464_v18, %v133_v12 }
  0xd2   :  { %v217_v14 = vpop.f32.mrf.mxu1 }
  0xd3   :  { %v218_v15 = vadd.f32 %v3145_v13, %v217_v14 }
  0xd4   :  { %v2629_v16 = vpop.f32.mrf.mxu1 }
  0xd5   :  { %v222_v17 = vrot.slane %v218_v15, 1  ;;  %v225_v22 = vadd.f32 %v218_v15, %v3156_v21 }
  0xd7   :  { %241 = vrot.lane.b32.xlu0 %v222_v17, %s3000_s22  ;;  %v226_v20 = vadd.f32 %v222_v17, %v3153_v19  ;;  %v2468_v24 = vmul.f32 -1.442695, %v225_v22 }
  0xd9   :  { %v2469_v23 = vmul.f32 -1.442695, %v226_v20 }
  0xdb   :  { %239 = vrot.lane.b32.xlu0 %v218_v15, %s3000_s22  ;;  %2819 = vpow2.f32 %v2469_v23 }
  0xdc   :  { %2821 = vpow2.f32 %v2468_v24 }
  0xe8   :  { %v2820_v25 = vpop.eup %2819 }
  0xe9   :  { %v234_v26 = vadd.f32 1.0, %v2820_v25  ;;  %v2822_v27 = vpop.eup %2821 }
  0xea   :  { %v233_v28 = vadd.f32 1.0, %v2822_v27 }
  0xeb   :  { %2823 = vrcp.f32 %v234_v26 }
  0xec   :  { %2825 = vrcp.f32 %v233_v28 }
  0xf8   :  { %v2824_v29 = vpop.eup %2823 }
  0xf9   :  { %v2826_v32 = vpop.eup %2825  ;;  %v260_v41 = vsub.f32 1.0, %v2824_v29  ;;  %v272_v43 = vmul.f32 0.0, %v2824_v29 }
  0xfa   :  { %v259_v46 = vsub.f32 1.0, %v2826_v32  ;;  %v271_v48 = vmul.f32 0.0, %v2826_v32 }
 0x149   :  { %v242_v30 = vpop.permute.xlu0 %241 }
 0x14a   :  { %v246_v31 = vmul.f32 %v2824_v29, %v242_v30 }
 0x14c   :  { %251 = vrot.lane.b32.xlu1 %v246_v31, %s3000_s22 }
 0x14d   :  { %v240_v33 = vpop.permute.xlu0 %239 }
 0x14e   :  { %v245_v34 = vmul.f32 %v2826_v32, %v240_v33 }
 0x150   :  { %249 = vrot.lane.b32.xlu1 %v245_v34, %s3000_s22 }
 0x1be   :  { %v252_v35 = vpop.permute.xlu1 %251 }
 0x1bf   :  { %v256_v36 = vadd.f32 %v252_v35, %v3153_v19 }
 0x1c1   :  { %2827 = vtanh.f32 %v256_v36 }
 0x1c2   :  { %v250_v37 = vpop.permute.xlu1 %249 }
 0x1c3   :  { %v255_v38 = vadd.f32 %v250_v37, %v3156_v21 }
 0x1c5   :  { %2829 = vtanh.f32 %v255_v38 }
 0x1ce   :  { %v2828_v39 = vpop.eup %2827 }
 0x1cf   :  { %265 = vrot.lane.b32.xlu0 %v2828_v39, %s3001_s4 }
 0x1d2   :  { %v2830_v40 = vpop.eup %2829 }
 0x1d3   :  { %263 = vrot.lane.b32.xlu1 %v2830_v40, %s3001_s4 }
 0x241   :  { %v266_v42 = vpop.permute.xlu0 %265 }
 0x242   :  { %v270_v44 = vmul.f32 %v266_v42, %v260_v41 }
 0x244   :  { %v3165_v45 = vadd.f32 %v272_v43, %v270_v44 }
 0x245   :  { %v264_v47 = vpop.permute.xlu1 %263 }
 0x246   :  { %v269_v49 = vmul.f32 %v264_v47, %v259_v46  ;;  %v277_v50 = vrot.slane %v3165_v45, 7 }
 0x248   :  { %v3168_v51 = vadd.f32 %v271_v48, %v269_v49 }
 0x24a   :  { %v279_v52 = vsel %vm278_vm2, %v277_v50, %v3168_v51  ;;  %v404_v25 = vrot.slane %v3168_v51, 7 }
 0x24b   :  { %280 = vrot.lane.b32.xlu0 %v279_v52, %s3001_s4 }
 0x2bd   :  { %v281_v53 = vpop.permute.xlu0 %280 }
 0x2be   :  { %2639 = vmatmul.mubr.msk.f32.vlgmr.msra.gmra.mxu0 %vm60_vm0, %v281_v53 }
 0x2bf   :  { %2653 = vmatpush3.msra.mxu0 %v3086_v5  ;;  %2660 = vmatprep.mubr.msk.f32.mxu0 %vm2999_vm1, %v2998_v3 }
 0x2c0   :  { %2654 = vmatprep.subr.mxu0 %v2998_v3 }
 0x2c1   :  { %2655 = vmatpush3.msra.mxu0 %v3095_v7 }
 0x2c2   :  { %2656 = vmatprep.subr.mxu0 %v2998_v3 }
 0x2c3   :  { %2657 = vmatpush3.msra.mxu0 %v3105_v9 }
 0x2c4   :  { %2658 = vmatprep.subr.mxu0 %v2998_v3 }
 0x2c5   :  { %2659 = vmatpush3.msra.mxu0 %v3116_v10 }
 0x2c6   :  { %2674 = vmatprep.subr.mxu0 %v2998_v3 }
 0x37e   :  { %v350_v54 = vpop.f32.mrf.mxu0 }
 0x37f   :  { %v351_v55 = vadd.f32 %v3145_v13, %v350_v54 }
 0x380   :  { %v2640_v56 = vpop.f32.mrf.mxu0 }
 0x381   :  { %374 = vrot.lane.b32.xlu0 %v351_v55, %s3000_s22  ;;  %v355_v57 = vrot.slane %v351_v55, 7  ;;  %v359_v58 = vadd.f32 %v351_v55, %v3153_v19 }
 0x383   :  { %372 = vrot.lane.b32.xlu1 %v355_v57, %s3000_s22  ;;  %v358_v59 = vadd.f32 %v355_v57, %v3156_v21  ;;  %v2472_v60 = vmul.f32 -1.442695, %v359_v58 }
 0x385   :  { %v2471_v61 = vmul.f32 -1.442695, %v358_v59  ;;  %2831 = vpow2.f32 %v2472_v60 }
 0x387   :  { %2833 = vpow2.f32 %v2471_v61 }
 0x392   :  { %v2832_v62 = vpop.eup %2831 }
 0x393   :  { %v367_v0 = vadd.f32 1.0, %v2832_v62 }
 0x394   :  { %v2834_v63 = vpop.eup %2833 }
 0x395   :  { %v366_v1 = vadd.f32 1.0, %v2834_v63  ;;  %2835 = vrcp.f32 %v367_v0 }
 0x397   :  { %2837 = vrcp.f32 %v366_v1 }
 0x3a2   :  { %v2836_v2 = vpop.eup %2835 }
 0x3a3   :  { %v393_v23 = vsub.f32 1.0, %v2836_v2  ;;  %v408_v30 = vmul.f32 %v2836_v2, %v277_v50 }
 0x3a4   :  { %v2838_v8 = vpop.eup %2837 }
 0x3a5   :  { %v392_v24 = vsub.f32 1.0, %v2838_v8  ;;  %v407_v28 = vmul.f32 %v2838_v8, %v404_v25 }
 0x3f3   :  { %v375_v4 = vpop.permute.xlu0 %374 }
 0x3f4   :  { %v379_v6 = vmul.f32 %v2836_v2, %v375_v4 }
 0x3f5   :  { %v373_v11 = vpop.permute.xlu1 %372 }
 0x3f6   :  { %v378_v12 = vmul.f32 %v2838_v8, %v373_v11  ;;  %384 = vrot.lane.b32.xlu0 %v379_v6, %s3000_s22 }
 0x3f8   :  { %382 = vrot.lane.b32.xlu1 %v378_v12, %s3000_s22 }
 0x468   :  { %v385_v14 = vpop.permute.xlu0 %384 }
 0x469   :  { %v389_v15 = vadd.f32 %v385_v14, %v3153_v19 }
 0x46a   :  { %v383_v16 = vpop.permute.xlu1 %382 }
 0x46b   :  { %2839 = vtanh.f32 %v389_v15  ;;  %v388_v17 = vadd.f32 %v383_v16, %v3156_v21 }
 0x46d   :  { %2841 = vtanh.f32 %v388_v17 }
 0x478   :  { %v2840_v18 = vpop.eup %2839 }
 0x479   :  { %398 = vrot.lane.b32.xlu0 %v2840_v18, %s3001_s4 }
 0x47a   :  { %v2842_v20 = vpop.eup %2841 }
 0x47b   :  { %396 = vrot.lane.b32.xlu1 %v2842_v20, %s3001_s4 }
 0x4eb   :  { %v399_v22 = vpop.permute.xlu0 %398 }
 0x4ec   :  { %v403_v27 = vmul.f32 %v399_v22, %v393_v23 }
 0x4ed   :  { %v397_v26 = vpop.permute.xlu1 %396 }
 0x4ee   :  { %v402_v29 = vmul.f32 %v397_v26, %v392_v24  ;;  %v3198_v32 = vadd.f32 %v408_v30, %v403_v27 }
 0x4f0   :  { %v3196_v31 = vadd.f32 %v407_v28, %v402_v29  ;;  %v541_v0 = vrot.slane %v3198_v32, 7  ;;  %v1240_v16 = vsel %vm1238_vm3, %v3165_v45, %v3198_v32 }
 0x4f2   :  { %v413_v33 = vrot.slane %v3196_v31, 1  ;;  %v540_v4 = vrot.slane %v3196_v31, 7  ;;  %v1239_v18 = vsel %vm1238_vm3, %v3168_v51, %v3196_v31 }
 0x4f4   :  { %v414_v34 = vsel %vm278_vm2, %v3198_v32, %v413_v33 }
 0x4f5   :  { %415 = vrot.lane.b32.xlu1 %v414_v34, %s3001_s4 }
 0x567   :  { %v416_v35 = vpop.permute.xlu1 %415 }
 0x568   :  { %2650 = vmatmul.mubr.msk.f32.vlgmr.msra.gmra.mxu1 %vm60_vm0, %v416_v35 }
 0x569   :  { %2664 = vmatpush3.msra.mxu1 %v3086_v5  ;;  %2671 = vmatprep.mubr.msk.f32.mxu1 %vm2999_vm1, %v2998_v3 }
 0x56a   :  { %2665 = vmatprep.subr.mxu1 %v2998_v3 }
 0x56b   :  { %2666 = vmatpush3.msra.mxu1 %v3095_v7 }
 0x56c   :  { %2667 = vmatprep.subr.mxu1 %v2998_v3 }
 0x56d   :  { %2668 = vmatpush3.msra.mxu1 %v3105_v9 }
 0x56e   :  { %2669 = vmatprep.subr.mxu1 %v2998_v3 }
 0x56f   :  { %2670 = vmatpush3.msra.mxu1 %v3116_v10 }
 0x570   :  { %2685 = vmatprep.subr.mxu1 %v2998_v3 }
 0x628   :  { %v485_v36 = vpop.f32.mrf.mxu1 }
 0x629   :  { %v486_v37 = vadd.f32 %v3145_v13, %v485_v36 }
 0x62a   :  { %v2651_v38 = vpop.f32.mrf.mxu1 }
 0x62b   :  { %v490_v39 = vrot.slane %v486_v37, 6  ;;  %v491_v40 = vrot.slane %v486_v37, 7 }
 0x62d   :  { %510 = vrot.lane.b32.xlu1 %v491_v40, %s3000_s22  ;;  %508 = vrot.lane.b32.xlu0 %v490_v39, %s3000_s22  ;;  %v494_v41 = vadd.f32 %v490_v39, %v3156_v21  ;;  %v495_v42 = vadd.f32 %v491_v40, %v3153_v19 }
 0x62f   :  { %v2474_v43 = vmul.f32 -1.442695, %v494_v41  ;;  %v2475_v44 = vmul.f32 -1.442695, %v495_v42 }
 0x631   :  { %2843 = vpow2.f32 %v2474_v43 }
 0x632   :  { %2845 = vpow2.f32 %v2475_v44 }
 0x63e   :  { %v2844_v46 = vpop.eup %2843 }
 0x63f   :  { %v2846_v47 = vpop.eup %2845  ;;  %v502_v48 = vadd.f32 1.0, %v2844_v46 }
 0x640   :  { %v503_v49 = vadd.f32 1.0, %v2846_v47 }
 0x641   :  { %2847 = vrcp.f32 %v502_v48 }
 0x642   :  { %2849 = vrcp.f32 %v503_v49 }
 0x64e   :  { %v2848_v50 = vpop.eup %2847 }
 0x64f   :  { %v2850_v52 = vpop.eup %2849  ;;  %v528_v2 = vsub.f32 1.0, %v2848_v50  ;;  %v544_v12 = vmul.f32 %v2848_v50, %v540_v4 }
 0x650   :  { %v529_v63 = vsub.f32 1.0, %v2850_v52  ;;  %v545_v6 = vmul.f32 %v2850_v52, %v541_v0 }
 0x69f   :  { %v511_v53 = vpop.permute.xlu1 %510  ;;  %v509_v54 = vpop.permute.xlu0 %508 }
 0x6a0   :  { %v515_v55 = vmul.f32 %v2850_v52, %v511_v53  ;;  %v514_v56 = vmul.f32 %v2848_v50, %v509_v54 }
 0x6a2   :  { %520 = vrot.lane.b32.xlu1 %v515_v55, %s3000_s22  ;;  %518 = vrot.lane.b32.xlu0 %v514_v56, %s3000_s22 }
 0x714   :  { %v521_v57 = vpop.permute.xlu1 %520  ;;  %v519_v58 = vpop.permute.xlu0 %518 }
 0x715   :  { %v525_v59 = vadd.f32 %v521_v57, %v3153_v19  ;;  %v524_v60 = vadd.f32 %v519_v58, %v3156_v21 }
 0x717   :  { %2851 = vtanh.f32 %v525_v59 }
 0x718   :  { %2853 = vtanh.f32 %v524_v60 }
 0x724   :  { %v2852_v61 = vpop.eup %2851 }
 0x725   :  { %v2854_v62 = vpop.eup %2853  ;;  %534 = vrot.lane.b32.xlu1 %v2852_v61, %s3001_s4 }
 0x726   :  { %532 = vrot.lane.b32.xlu0 %v2854_v62, %s3001_s4 }
 0x797   :  { %v535_v1 = vpop.permute.xlu1 %534 }
 0x798   :  { %v539_v8 = vmul.f32 %v535_v1, %v529_v63  ;;  %v533_v11 = vpop.permute.xlu0 %532 }
 0x799   :  { %v538_v14 = vmul.f32 %v533_v11, %v528_v2 }
 0x79a   :  { %v3228_v15 = vadd.f32 %v545_v6, %v539_v8 }
 0x79b   :  { %v3233_v17 = vadd.f32 %v544_v12, %v538_v14 }
 0x79c   :  { %v3240_v20 = vsel %vm1241_vm4, %v1240_v16, %v3228_v15  ;;  %v551_v22 = vrot.slane %v3228_v15, 1  ;;  %v679_v53 = vrot.slane %v3228_v15, 7 }
 0x79d   :  { %v3245_v23 = vsel %vm1241_vm4, %v1239_v18, %v3233_v17  ;;  %v550_v24 = vrot.slane %v3233_v17, 2  ;;  %v678_v56 = vrot.slane %v3233_v17, 7 }
 0x79f   :  { %v552_v45 = vsel %vm278_vm2, %v551_v22, %v550_v24 }
 0x7a0   :  { %553 = vrot.lane.b32.xlu0 %v552_v45, %s3001_s4 }
 0x812   :  { %v554_v25 = vpop.permute.xlu0 %553 }
 0x813   :  { %2661 = vmatmul.mubr.msk.f32.vlgmr.msra.gmra.mxu0 %vm60_vm0, %v554_v25 }
 0x814   :  { %2675 = vmatpush3.msra.mxu0 %v3086_v5  ;;  %2682 = vmatprep.mubr.msk.f32.mxu0 %vm2999_vm1, %v2998_v3 }
 0x815   :  { %2676 = vmatprep.subr.mxu0 %v2998_v3 }
 0x816   :  { %2677 = vmatpush3.msra.mxu0 %v3095_v7 }
 0x817   :  { %2678 = vmatprep.subr.mxu0 %v2998_v3 }
 0x818   :  { %2679 = vmatpush3.msra.mxu0 %v3105_v9 }
 0x819   :  { %2680 = vmatprep.subr.mxu0 %v2998_v3 }
 0x81a   :  { %2681 = vmatpush3.msra.mxu0 %v3116_v10 }
 0x81b   :  { %2696 = vmatprep.subr.mxu0 %v2998_v3 }
 0x8d3   :  { %v623_v51 = vpop.f32.mrf.mxu0 }
 0x8d4   :  { %v624_v26 = vadd.f32 %v3145_v13, %v623_v51 }
 0x8d5   :  { %v2662_v27 = vpop.f32.mrf.mxu0 }
 0x8d6   :  { %v628_v28 = vrot.slane %v624_v26, 5  ;;  %v629_v29 = vrot.slane %v624_v26, 6 }
 0x8d8   :  { %648 = vrot.lane.b32.xlu0 %v629_v29, %s3000_s22  ;;  %646 = vrot.lane.b32.xlu1 %v628_v28, %s3000_s22  ;;  %v632_v30 = vadd.f32 %v628_v28, %v3156_v21  ;;  %v633_v31 = vadd.f32 %v629_v29, %v3153_v19 }
 0x8da   :  { %v2477_v32 = vmul.f32 -1.442695, %v632_v30  ;;  %v2478_v33 = vmul.f32 -1.442695, %v633_v31 }
 0x8dc   :  { %2855 = vpow2.f32 %v2477_v32 }
 0x8dd   :  { %2857 = vpow2.f32 %v2478_v33 }
 0x8e9   :  { %v2856_v34 = vpop.eup %2855 }
 0x8ea   :  { %v2858_v35 = vpop.eup %2857  ;;  %v640_v36 = vadd.f32 1.0, %v2856_v34 }
 0x8eb   :  { %v641_v37 = vadd.f32 1.0, %v2858_v35 }
 0x8ec   :  { %2859 = vrcp.f32 %v640_v36 }
 0x8ed   :  { %2861 = vrcp.f32 %v641_v37 }
 0x8f9   :  { %v2860_v38 = vpop.eup %2859 }
 0x8fa   :  { %v2862_v39 = vpop.eup %2861  ;;  %v666_v55 = vsub.f32 1.0, %v2860_v38  ;;  %v682_v60 = vmul.f32 %v2860_v38, %v678_v56 }
 0x8fb   :  { %v667_v52 = vsub.f32 1.0, %v2862_v39  ;;  %v683_v57 = vmul.f32 %v2862_v39, %v679_v53 }
 0x94a   :  { %v649_v40 = vpop.permute.xlu0 %648  ;;  %v647_v41 = vpop.permute.xlu1 %646 }
 0x94b   :  { %v653_v42 = vmul.f32 %v2862_v39, %v649_v40  ;;  %v652_v43 = vmul.f32 %v2860_v38, %v647_v41 }
 0x94d   :  { %658 = vrot.lane.b32.xlu0 %v653_v42, %s3000_s22  ;;  %656 = vrot.lane.b32.xlu1 %v652_v43, %s3000_s22 }
 0x9bf   :  { %v659_v44 = vpop.permute.xlu0 %658  ;;  %v657_v46 = vpop.permute.xlu1 %656 }
 0x9c0   :  { %v663_v47 = vadd.f32 %v659_v44, %v3153_v19  ;;  %v662_v48 = vadd.f32 %v657_v46, %v3156_v21 }
 0x9c2   :  { %2863 = vtanh.f32 %v663_v47 }
 0x9c3   :  { %2865 = vtanh.f32 %v662_v48 }
 0x9cf   :  { %v2864_v49 = vpop.eup %2863 }
 0x9d0   :  { %v2866_v50 = vpop.eup %2865  ;;  %672 = vrot.lane.b32.xlu0 %v2864_v49, %s3001_s4 }
 0x9d1   :  { %670 = vrot.lane.b32.xlu1 %v2866_v50, %s3001_s4 }
 0xa42   :  { %v673_v54 = vpop.permute.xlu0 %672 }
 0xa43   :  { %v677_v58 = vmul.f32 %v673_v54, %v667_v52  ;;  %v671_v59 = vpop.permute.xlu1 %670 }
 0xa44   :  { %v676_v61 = vmul.f32 %v671_v59, %v666_v55 }
 0xa45   :  { %v685_v62 = vadd.f32 %v683_v57, %v677_v58 }
 0xa46   :  { %v3274_v63 = vadd.f32 %v682_v60, %v676_v61 }
 0xa47   :  { %v3278_v0 = vsel %vm1244_vm5, %v3240_v20, %v685_v62  ;;  %v689_v1 = vrot.slane %v685_v62, 2  ;;  %v817_v38 = vrot.slane %v685_v62, 7 }
 0xa48   :  { %v3283_v2 = vsel %vm1244_vm5, %v3245_v23, %v3274_v63  ;;  %v688_v4 = vrot.slane %v3274_v63, 3  ;;  %v816_v41 = vrot.slane %v3274_v63, 7 }
 0xa4a   :  { %v690_v6 = vsel %vm278_vm2, %v689_v1, %v688_v4 }
 0xa4b   :  { %691 = vrot.lane.b32.xlu1 %v690_v6, %s3001_s4 }
 0xabd   :  { %v692_v8 = vpop.permute.xlu1 %691 }
 0xabe   :  { %2672 = vmatmul.mubr.msk.f32.vlgmr.msra.gmra.mxu1 %vm60_vm0, %v692_v8 }
 0xabf   :  { %2686 = vmatpush3.msra.mxu1 %v3086_v5  ;;  %2693 = vmatprep.mubr.msk.f32.mxu1 %vm2999_vm1, %v2998_v3 }
 0xac0   :  { %2687 = vmatprep.subr.mxu1 %v2998_v3 }
 0xac1   :  { %2688 = vmatpush3.msra.mxu1 %v3095_v7 }
 0xac2   :  { %2689 = vmatprep.subr.mxu1 %v2998_v3 }
 0xac3   :  { %2690 = vmatpush3.msra.mxu1 %v3105_v9 }
 0xac4   :  { %2691 = vmatprep.subr.mxu1 %v2998_v3 }
 0xac5   :  { %2692 = vmatpush3.msra.mxu1 %v3116_v10 }
 0xac6   :  { %2707 = vmatprep.subr.mxu1 %v2998_v3 }
 0xb7e   :  { %v761_v11 = vpop.f32.mrf.mxu1 }
 0xb7f   :  { %v762_v12 = vadd.f32 %v3145_v13, %v761_v11 }
 0xb80   :  { %v2673_v14 = vpop.f32.mrf.mxu1 }
 0xb81   :  { %v766_v15 = vrot.slane %v762_v12, 4  ;;  %v767_v16 = vrot.slane %v762_v12, 5 }
 0xb83   :  { %786 = vrot.lane.b32.xlu1 %v767_v16, %s3000_s22  ;;  %784 = vrot.lane.b32.xlu0 %v766_v15, %s3000_s22  ;;  %v770_v17 = vadd.f32 %v766_v15, %v3156_v21  ;;  %v771_v18 = vadd.f32 %v767_v16, %v3153_v19 }
 0xb85   :  { %v2480_v20 = vmul.f32 -1.442695, %v770_v17  ;;  %v2481_v22 = vmul.f32 -1.442695, %v771_v18 }
 0xb87   :  { %2867 = vpow2.f32 %v2480_v20 }
 0xb88   :  { %2869 = vpow2.f32 %v2481_v22 }
 0xb94   :  { %v2868_v23 = vpop.eup %2867 }
 0xb95   :  { %v2870_v24 = vpop.eup %2869  ;;  %v778_v45 = vadd.f32 1.0, %v2868_v23 }
 0xb96   :  { %v779_v25 = vadd.f32 1.0, %v2870_v24 }
 0xb97   :  { %2871 = vrcp.f32 %v778_v45 }
 0xb98   :  { %2873 = vrcp.f32 %v779_v25 }
 0xba4   :  { %v2872_v51 = vpop.eup %2871 }
 0xba5   :  { %v2874_v26 = vpop.eup %2873  ;;  %v804_v40 = vsub.f32 1.0, %v2872_v51  ;;  %v820_v46 = vmul.f32 %v2872_v51, %v816_v41 }
 0xba6   :  { %v805_v37 = vsub.f32 1.0, %v2874_v26  ;;  %v821_v42 = vmul.f32 %v2874_v26, %v817_v38 }
 0xbf5   :  { %v787_v27 = vpop.permute.xlu1 %786  ;;  %v785_v28 = vpop.permute.xlu0 %784 }
 0xbf6   :  { %v791_v29 = vmul.f32 %v2874_v26, %v787_v27  ;;  %v790_v30 = vmul.f32 %v2872_v51, %v785_v28 }
 0xbf8   :  { %796 = vrot.lane.b32.xlu1 %v791_v29, %s3000_s22  ;;  %794 = vrot.lane.b32.xlu0 %v790_v30, %s3000_s22 }
 0xc6a   :  { %v797_v31 = vpop.permute.xlu1 %796  ;;  %v795_v32 = vpop.permute.xlu0 %794 }
 0xc6b   :  { %v801_v33 = vadd.f32 %v797_v31, %v3153_v19  ;;  %v800_v34 = vadd.f32 %v795_v32, %v3156_v21 }
 0xc6d   :  { %2875 = vtanh.f32 %v801_v33 }
 0xc6e   :  { %2877 = vtanh.f32 %v800_v34 }
 0xc7a   :  { %v2876_v35 = vpop.eup %2875 }
 0xc7b   :  { %v2878_v36 = vpop.eup %2877  ;;  %810 = vrot.lane.b32.xlu1 %v2876_v35, %s3001_s4 }
 0xc7c   :  { %808 = vrot.lane.b32.xlu0 %v2878_v36, %s3001_s4 }
 0xced   :  { %v811_v39 = vpop.permute.xlu1 %810 }
 0xcee   :  { %v815_v43 = vmul.f32 %v811_v39, %v805_v37  ;;  %v809_v44 = vpop.permute.xlu0 %808 }
 0xcef   :  { %v814_v47 = vmul.f32 %v809_v44, %v804_v40 }
 0xcf0   :  { %v823_v48 = vadd.f32 %v821_v42, %v815_v43 }
 0xcf1   :  { %v3311_v49 = vadd.f32 %v820_v46, %v814_v47 }
 0xcf2   :  { %v3314_v50 = vsel %vm1247_vm6, %v3278_v0, %v823_v48  ;;  %v827_v52 = vrot.slane %v823_v48, 3  ;;  %v955_v23 = vrot.slane %v823_v48, 7 }
 0xcf3   :  { %v3318_v53 = vsel %vm1247_vm6, %v3283_v2, %v3311_v49  ;;  %v826_v54 = vrot.slane %v3311_v49, 4  ;;  %v954_v25 = vrot.slane %v3311_v49, 7 }
 0xcf5   :  { %v828_v55 = vsel %vm278_vm2, %v827_v52, %v826_v54 }
 0xcf6   :  { %829 = vrot.lane.b32.xlu0 %v828_v55, %s3001_s4 }
 0xd68   :  { %v830_v56 = vpop.permute.xlu0 %829 }
 0xd69   :  { %2683 = vmatmul.mubr.msk.f32.vlgmr.msra.gmra.mxu0 %vm60_vm0, %v830_v56 }
 0xd6a   :  { %2697 = vmatpush3.msra.mxu0 %v3086_v5  ;;  %2704 = vmatprep.mubr.msk.f32.mxu0 %vm2999_vm1, %v2998_v3 }
 0xd6b   :  { %2698 = vmatprep.subr.mxu0 %v2998_v3 }
 0xd6c   :  { %2699 = vmatpush3.msra.mxu0 %v3095_v7 }
 0xd6d   :  { %2700 = vmatprep.subr.mxu0 %v2998_v3 }
 0xd6e   :  { %2701 = vmatpush3.msra.mxu0 %v3105_v9 }
 0xd6f   :  { %2702 = vmatprep.subr.mxu0 %v2998_v3 }
 0xd70   :  { %2703 = vmatpush3.msra.mxu0 %v3116_v10 }
 0xd71   :  { %2718 = vmatprep.subr.mxu0 %v2998_v3 }
 0xe29   :  { %v899_v57 = vpop.f32.mrf.mxu0 }
 0xe2a   :  { %v900_v5 = vadd.f32 %v3145_v13, %v899_v57 }
 0xe2b   :  { %v2684_v58 = vpop.f32.mrf.mxu0 }
 0xe2c   :  { %v904_v59 = vrot.slane %v900_v5, 3  ;;  %v905_v60 = vrot.slane %v900_v5, 4 }
 0xe2e   :  { %924 = vrot.lane.b32.xlu0 %v905_v60, %s3000_s22  ;;  %922 = vrot.lane.b32.xlu1 %v904_v59, %s3000_s22  ;;  %v908_v7 = vadd.f32 %v904_v59, %v3156_v21  ;;  %v909_v9 = vadd.f32 %v905_v60, %v3153_v19 }
 0xe30   :  { %v2483_v61 = vmul.f32 -1.442695, %v908_v7  ;;  %v2484_v62 = vmul.f32 -1.442695, %v909_v9 }
 0xe32   :  { %2879 = vpow2.f32 %v2483_v61  ;;  %v1264_v61 = vld [vmem:[%s3698_s6 + $0x18] sm:$0xff] }
 0xe33   :  { %2881 = vpow2.f32 %v2484_v62  ;;  %v1263_v62 = vld [vmem:[%s3698_s6 + $0x10] sm:$0xff] }
 0xe3f   :  { %v2880_v10 = vpop.eup %2879 }
 0xe40   :  { %v2882_v63 = vpop.eup %2881  ;;  %v916_v0 = vadd.f32 1.0, %v2880_v10 }
 0xe41   :  { %v917_v1 = vadd.f32 1.0, %v2882_v63 }
 0xe42   :  { %2883 = vrcp.f32 %v916_v0 }
 0xe43   :  { %2885 = vrcp.f32 %v917_v1 }
 0xe4f   :  { %v2884_v2 = vpop.eup %2883 }
 0xe50   :  { %v2886_v4 = vpop.eup %2885  ;;  %v942_v45 = vsub.f32 1.0, %v2884_v2  ;;  %v958_v28 = vmul.f32 %v2884_v2, %v954_v25 }
 0xe51   :  { %v943_v22 = vsub.f32 1.0, %v2886_v4  ;;  %v959_v51 = vmul.f32 %v2886_v4, %v955_v23 }
 0xea0   :  { %v925_v6 = vpop.permute.xlu0 %924  ;;  %v923_v8 = vpop.permute.xlu1 %922 }
 0xea1   :  { %v929_v11 = vmul.f32 %v2886_v4, %v925_v6  ;;  %v928_v12 = vmul.f32 %v2884_v2, %v923_v8  ;;  %v1262_v4 = vld [vmem:[%s3698_s6 + $0x8] sm:$0xff] }
 0xea3   :  { %934 = vrot.lane.b32.xlu0 %v929_v11, %s3000_s22  ;;  %932 = vrot.lane.b32.xlu1 %v928_v12, %s3000_s22 }
 0xf15   :  { %v935_v14 = vpop.permute.xlu0 %934  ;;  %v933_v15 = vpop.permute.xlu1 %932 }
 0xf16   :  { %v939_v16 = vadd.f32 %v935_v14, %v3153_v19  ;;  %v938_v17 = vadd.f32 %v933_v15, %v3156_v21  ;;  %v1261_v15 = vld [vmem:[%s3698_s6] sm:$0xff] }
 0xf18   :  { %2887 = vtanh.f32 %v939_v16  ;;  %v2818_v16 = vld [vmem:[%s3693_s1] sm:$0xff]  }
 0xf19   :  { %2889 = vtanh.f32 %v938_v17 }
 0xf25   :  { %v2888_v18 = vpop.eup %2887 }
 0xf26   :  { %v2890_v20 = vpop.eup %2889  ;;  %948 = vrot.lane.b32.xlu0 %v2888_v18, %s3001_s4 }
 0xf27   :  { %946 = vrot.lane.b32.xlu1 %v2890_v20, %s3001_s4  ;;  %v3398_v20 = vld [vmem:[%s3699_s7 + $0x18] sm:$0xff] }
 0xf98   :  { %v949_v24 = vpop.permute.xlu0 %948 }
 0xf99   :  { %v953_v26 = vmul.f32 %v949_v24, %v943_v22  ;;  %v947_v27 = vpop.permute.xlu1 %946 }
 0xf9a   :  { %v952_v29 = vmul.f32 %v947_v27, %v942_v45  ;;  %v3414_v45 = vld [vmem:[%s3699_s7 + $0x10] sm:$0xff]  ;;  %v3434_v27 = vld [vmem:[%s3699_s7] sm:$0xff] }
 0xf9b   :  { %v961_v30 = vadd.f32 %v959_v51, %v953_v26  ;;  %v3426_v26 = vld [vmem:[%s3699_s7 + $0x8] sm:$0xff] }
 0xf9c   :  { %v3346_v31 = vadd.f32 %v958_v28, %v952_v29 }
 0xf9d   :  { %v965_v32 = vrot.slane %v961_v30, 4  ;;  %v3349_v33 = vsel %vm1250_vm7, %v3314_v50, %v961_v30  ;;  %v1093_v63 = vrot.slane %v961_v30, 7 }
 0xf9e   :  { %v964_v34 = vrot.slane %v3346_v31, 5  ;;  %v3354_v35 = vsel %vm1250_vm7, %v3318_v53, %v3346_v31  ;;  %v1092_v2 = vrot.slane %v3346_v31, 7 }
 0xfa0   :  { %v966_v36 = vsel %vm278_vm2, %v965_v32, %v964_v34 }
 0xfa1   :  { %967 = vrot.lane.b32.xlu1 %v966_v36, %s3001_s4 }
0x1013   :  { %v968_v37 = vpop.permute.xlu1 %967 }
0x1014   :  { %2694 = vmatmul.mubr.msk.f32.vlgmr.msra.gmra.mxu1 %vm60_vm0, %v968_v37 }
0x1015   :  { %2715 = vmatprep.mubr.msk.f32.mxu1 %vm2999_vm1, %v2998_v3  ;;  %2708 = vmatpush3.msra.mxu1 %v1264_v61 }
0x1016   :  { %2709 = vmatprep.subr.mxu1 %v2998_v3 }
0x1017   :  { %2710 = vmatpush3.msra.mxu1 %v1263_v62 }
0x1018   :  { %2711 = vmatprep.subr.mxu1 %v2998_v3 }
0x1019   :  { %2712 = vmatpush3.msra.mxu1 %v1262_v4 }
0x101a   :  { %2713 = vmatprep.subr.mxu1 %v2998_v3 }
0x101b   :  { %2714 = vmatpush3.msra.mxu1 %v1261_v15 }
0x101c   :  { %2716 = vmatmul.mubr.msk.f32.vlgmr.msra.gmra.mxu1 %vm60_vm0, %v2818_v16  ;;  %2729 = vmatprep.subr.mxu1 %v2998_v3 }
0x101d   :  { %2730 = vmatpush3.msra.mxu1 %v3398_v20  ;;  %2737 = vmatprep.mubr.msk.f32.mxu1 %vm2999_vm1, %v2998_v3 }
0x101e   :  { %2731 = vmatprep.subr.mxu1 %v2998_v3 }
0x101f   :  { %2732 = vmatpush3.msra.mxu1 %v3414_v45 }
0x1020   :  { %2733 = vmatprep.subr.mxu1 %v2998_v3 }
0x1021   :  { %2734 = vmatpush3.msra.mxu1 %v3426_v26 }
0x1022   :  { %2735 = vmatprep.subr.mxu1 %v2998_v3 }
0x1023   :  { %2736 = vmatpush3.msra.mxu1 %v3434_v27 }
0x1024   :  { %2751 = vmatprep.subr.mxu1 %v2998_v3 }
0x10d4   :  { %v1037_v38 = vpop.f32.mrf.mxu1 }
0x10d5   :  { %v1038_v39 = vadd.f32 %v3145_v13, %v1037_v38  ;;  %v2491_v38 = vld [vmem:[%s3700_s8] ss:$0 sm:$0xff] }
0x10d6   :  { %v2695_v40 = vpop.f32.mrf.mxu1 }
0x10d7   :  { %v1042_v41 = vrot.slane %v1038_v39, 2  ;;  %v1043_v42 = vrot.slane %v1038_v39, 3 }
0x10d9   :  { %1062 = vrot.lane.b32.xlu1 %v1043_v42, %s3000_s22  ;;  %1060 = vrot.lane.b32.xlu0 %v1042_v41, %s3000_s22  ;;  %v1046_v43 = vadd.f32 %v1042_v41, %v3156_v21  ;;  %v1047_v44 = vadd.f32 %v1043_v42, %v3153_v19 }
0x10db   :  { %v2486_v46 = vmul.f32 -1.442695, %v1046_v43  ;;  %v2487_v47 = vmul.f32 -1.442695, %v1047_v44 }
0x10dc   :  { %v1348_v29 = vpop.f32.mrf.mxu1 }
0x10dd   :  { %2891 = vpow2.f32 %v2486_v46  ;;  %v3473_v39 = vadd.f32 %v2491_v38, %v1348_v29 }
0x10de   :  { %2893 = vpow2.f32 %v2487_v47  ;;  %v2717_v30 = vpop.f32.mrf.mxu1 }
0x10df   :  { %v3477_v40 = vcombine.high %v3473_v39, %v3473_v39 }
0x10ea   :  { %v2892_v48 = vpop.eup %2891 }
0x10eb   :  { %v2894_v49 = vpop.eup %2893  ;;  %v1054_v50 = vadd.f32 1.0, %v2892_v48 }
0x10ec   :  { %v1055_v52 = vadd.f32 1.0, %v2894_v49 }
0x10ed   :  { %2895 = vrcp.f32 %v1054_v50 }
0x10ee   :  { %2897 = vrcp.f32 %v1055_v52 }
0x10fa   :  { %v2896_v13 = vpop.eup %2895 }
0x10fb   :  { %v2898_v53 = vpop.eup %2897  ;;  %v1080_v1 = vsub.f32 1.0, %v2896_v13  ;;  %v1096_v12 = vmul.f32 %v2896_v13, %v1092_v2 }
0x10fc   :  { %v1081_v10 = vsub.f32 1.0, %v2898_v53  ;;  %v1097_v6 = vmul.f32 %v2898_v53, %v1093_v63 }
0x114b   :  { %v1063_v54 = vpop.permute.xlu1 %1062  ;;  %v1061_v55 = vpop.permute.xlu0 %1060 }
0x114c   :  { %v1067_v56 = vmul.f32 %v2898_v53, %v1063_v54  ;;  %v1066_v57 = vmul.f32 %v2896_v13, %v1061_v55 }
0x114e   :  { %1072 = vrot.lane.b32.xlu1 %v1067_v56, %s3000_s22  ;;  %1070 = vrot.lane.b32.xlu0 %v1066_v57, %s3000_s22 }
0x11c0   :  { %v1073_v5 = vpop.permute.xlu1 %1072  ;;  %v1071_v58 = vpop.permute.xlu0 %1070 }
0x11c1   :  { %v1077_v59 = vadd.f32 %v1073_v5, %v3153_v19  ;;  %v1076_v60 = vadd.f32 %v1071_v58, %v3156_v21 }
0x11c3   :  { %2899 = vtanh.f32 %v1077_v59 }
0x11c4   :  { %2901 = vtanh.f32 %v1076_v60 }
0x11d0   :  { %v2900_v7 = vpop.eup %2899 }
0x11d1   :  { %v2902_v9 = vpop.eup %2901  ;;  %1086 = vrot.lane.b32.xlu1 %v2900_v7, %s3001_s4  ;;  %v1487_v7 = vlaneseq }
0x11d2   :  { %1084 = vrot.lane.b32.xlu0 %v2902_v9, %s3001_s4 }
0x11d3   :  { %v3488_v61 = vshrl.u32 %v1487_v7, 7 }
0x1243   :  { %v1087_v0 = vpop.permute.xlu1 %1086 }
0x1244   :  { %v1091_v8 = vmul.f32 %v1087_v0, %v1081_v10  ;;  %v1085_v11 = vpop.permute.xlu0 %1084 }
0x1245   :  { %v1090_v14 = vmul.f32 %v1085_v11, %v1080_v1 }
0x1246   :  { %v3391_v17 = vadd.f32 %v1097_v6, %v1091_v8  ;;  %v1489_v8 = vsub.s32 0, %v3488_v61 }
0x1247   :  { %v3393_v18 = vadd.f32 %v1096_v12, %v1090_v14 }
0x1248   :  { %v1103_v22 = vrot.slane %v3391_v17, 5  ;;  %v3408_v23 = vsel %vm1253_vm8, %v3349_v33, %v3391_v17  ;;  %v3465_v33 = vld [vmem:[%s3701_s9] ss:$0 sm:$0xff] }
0x1249   :  { %v1102_v24 = vrot.slane %v3393_v18, 6  ;;  %v3419_v25 = vsel %vm1253_vm8, %v3354_v35, %v3393_v18 }
0x124b   :  { %v1104_v51 = vsel %vm278_vm2, %v1103_v22, %v1102_v24 }
0x124c   :  { %1105 = vrot.lane.b32.xlu0 %v1104_v51, %s3001_s4 }
0x12be   :  { %v1106_v28 = vpop.permute.xlu0 %1105 }
0x12bf   :  { %2705 = vmatmul.mubr.msk.f32.vlgmr.msra.gmra.mxu0 %vm60_vm0, %v1106_v28 }
0x12c0   :  { %2719 = vmatpush3.msra.mxu0 %v3398_v20  ;;  %2726 = vmatprep.mubr.msk.f32.mxu0 %vm2999_vm1, %v2998_v3 }
0x12c1   :  { %2720 = vmatprep.subr.mxu0 %v2998_v3 }
0x12c2   :  { %2721 = vmatpush3.msra.mxu0 %v3414_v45 }
0x12c3   :  { %2722 = vmatprep.subr.mxu0 %v2998_v3 }
0x12c4   :  { %2723 = vmatpush3.msra.mxu0 %v3426_v26 }
0x12c5   :  { %2724 = vmatprep.subr.mxu0 %v2998_v3 }
0x12c6   :  { %2725 = vmatpush3.msra.mxu0 %v3434_v27 }
0x12c7   :  { %2727 = vmatmul.mubr.f32.vlgmr.msra.gmra.mxu0 %v2998_v3  ;;  %2740 = vmatprep.subr.mxu0 %v2998_v3 }
0x12c8   :  { %2741 = vmatpush3.msra.mxu0 %v3398_v20  ;;  %2748 = vmatprep.mubr.msk.f32.mxu0 %vm2999_vm1, %v2998_v3 }
0x12c9   :  { %2742 = vmatprep.subr.mxu0 %v2998_v3 }
0x12ca   :  { %2743 = vmatpush3.msra.mxu0 %v3414_v45 }
0x12cb   :  { %2744 = vmatprep.subr.mxu0 %v2998_v3 }
0x12cc   :  { %2745 = vmatpush3.msra.mxu0 %v3426_v26 }
0x12cd   :  { %2746 = vmatprep.subr.mxu0 %v2998_v3 }
0x12ce   :  { %2747 = vmatpush3.msra.mxu0 %v3434_v27 }
0x137f   :  { %v3460_v31 = vpop.f32.mrf.mxu0 }
0x1381   :  { %v2706_v32 = vpop.f32.mrf.mxu0 }
0x1387   :  { %v1427_v34 = vpop.f32.mrf.mxu0 }
0x1388   :  { %v1428_v35 = vadd.f32 %v3465_v33, %v1427_v34 }
0x1389   :  { %v2728_v36 = vpop.f32.mrf.mxu0 }
0x138a   :  { %1449 = vrot.lane.b32.xlu1 %v1428_v35, %s3000_s22  ;;  %v1432_v37 = vrot.slane %v1428_v35, 1  ;;  %v1435_v41 = vadd.f32 %v1428_v35, %v3473_v39 }
0x138c   :  { %1451 = vrot.lane.b32.xlu0 %v1432_v37, %s3000_s22  ;;  %v1436_v42 = vadd.f32 %v1432_v37, %v3477_v40  ;;  %v2494_v43 = vmul.f32 -1.442695, %v1435_v41 }
0x138e   :  { %v2495_v44 = vmul.f32 -1.442695, %v1436_v42  ;;  %2903 = vpow2.f32 %v2494_v43 }
0x1390   :  { %2905 = vpow2.f32 %v2495_v44 }
0x139b   :  { %v2904_v46 = vpop.eup %2903 }
0x139c   :  { %v1443_v48 = vadd.f32 1.0, %v2904_v46 }
0x139d   :  { %v2906_v47 = vpop.eup %2905 }
0x139e   :  { %v1444_v49 = vadd.f32 1.0, %v2906_v47  ;;  %2907 = vrcp.f32 %v1443_v48 }
0x13a0   :  { %2909 = vrcp.f32 %v1444_v49 }
0x13ab   :  { %v2908_v50 = vpop.eup %2907 }
0x13ac   :  { %v1469_v9 = vsub.f32 1.0, %v2908_v50  ;;  %v1481_v10 = vmul.f32 0.0, %v2908_v50 }
0x13ad   :  { %v2910_v53 = vpop.eup %2909 }
0x13ae   :  { %v1470_v0 = vsub.f32 1.0, %v2910_v53  ;;  %v1482_v4 = vmul.f32 0.0, %v2910_v53 }
0x13fc   :  { %v1450_v52 = vpop.permute.xlu1 %1449 }
0x13fd   :  { %v1455_v13 = vmul.f32 %v2908_v50, %v1450_v52 }
0x13fe   :  { %v1452_v54 = vpop.permute.xlu0 %1451 }
0x13ff   :  { %v1456_v55 = vmul.f32 %v2910_v53, %v1452_v54  ;;  %1459 = vrot.lane.b32.xlu1 %v1455_v13, %s3000_s22 }
0x1401   :  { %1461 = vrot.lane.b32.xlu0 %v1456_v55, %s3000_s22 }
0x1471   :  { %v1460_v56 = vpop.permute.xlu1 %1459 }
0x1472   :  { %v1465_v57 = vadd.f32 %v1460_v56, %v3473_v39 }
0x1473   :  { %v1462_v5 = vpop.permute.xlu0 %1461 }
0x1474   :  { %2911 = vtanh.f32 %v1465_v57  ;;  %v1466_v58 = vadd.f32 %v1462_v5, %v3477_v40 }
0x1476   :  { %2913 = vtanh.f32 %v1466_v58 }
0x1481   :  { %v2912_v59 = vpop.eup %2911 }
0x1482   :  { %1473 = vrot.lane.b32.xlu1 %v2912_v59, %s3001_s4 }
0x1483   :  { %v2914_v60 = vpop.eup %2913 }
0x1484   :  { %1475 = vrot.lane.b32.xlu0 %v2914_v60, %s3001_s4  ;;  %v1632_v60 = vsub.s32 1, %v3488_v61 }
0x14f4   :  { %v1474_v62 = vpop.permute.xlu1 %1473 }
0x14f5   :  { %v1479_v63 = vmul.f32 %v1474_v62, %v1469_v9 }
0x14f6   :  { %v1476_v1 = vpop.permute.xlu0 %1475 }
0x14f7   :  { %v3490_v2 = vadd.f32 %v1481_v10, %v1479_v63  ;;  %v1480_v6 = vmul.f32 %v1476_v1, %v1470_v0 }
0x14f9   :  { %v3493_v11 = vadd.f32 %v1482_v4, %v1480_v6  ;;  %v1490_v12 = vrot.slane %v3490_v2, %v1489_v8  ;;  %v1620_v56 = vrot.slane %v3490_v2, 7 }
0x14fb   :  { %v1494_v14 = vrot.slane %v3493_v11, %v1489_v8  ;;  %v1621_v52 = vrot.slane %v3493_v11, 7 }
0x14fd   :  { %v1495_v15 = vsel %vm278_vm2, %v1494_v14, %v1490_v12 }
0x14fe   :  { %1496 = vrot.lane.b32.xlu1 %v1495_v15, %s3001_s4 }
0x1570   :  { %v1497_v16 = vpop.permute.xlu1 %1496 }
0x1571   :  { %2738 = vmatmul.mubr.msk.f32.vlgmr.msra.gmra.mxu1 %vm60_vm0, %v1497_v16 }
0x1572   :  { %2752 = vmatpush3.msra.mxu1 %v3398_v20  ;;  %2759 = vmatprep.mubr.msk.f32.mxu1 %vm2999_vm1, %v2998_v3 }
0x1573   :  { %2753 = vmatprep.subr.mxu1 %v2998_v3 }
0x1574   :  { %2754 = vmatpush3.msra.mxu1 %v3414_v45 }
0x1575   :  { %2755 = vmatprep.subr.mxu1 %v2998_v3 }
0x1576   :  { %2756 = vmatpush3.msra.mxu1 %v3426_v26 }
0x1577   :  { %2757 = vmatprep.subr.mxu1 %v2998_v3 }
0x1578   :  { %2758 = vmatpush3.msra.mxu1 %v3434_v27 }
0x1579   :  { %2773 = vmatprep.subr.mxu1 %v2998_v3 }
0x1631   :  { %v1566_v22 = vpop.f32.mrf.mxu1 }
0x1632   :  { %v1567_v20 = vadd.f32 %v3465_v33, %v1566_v22 }
0x1633   :  { %v2739_v24 = vpop.f32.mrf.mxu1 }
0x1634   :  { %1590 = vrot.lane.b32.xlu1 %v1567_v20, %s3000_s22  ;;  %v1571_v51 = vrot.slane %v1567_v20, 7  ;;  %v1575_v45 = vadd.f32 %v1567_v20, %v3477_v40 }
0x1636   :  { %1588 = vrot.lane.b32.xlu0 %v1571_v51, %s3000_s22  ;;  %v1574_v28 = vadd.f32 %v1571_v51, %v3473_v39  ;;  %v2498_v26 = vmul.f32 -1.442695, %v1575_v45 }
0x1638   :  { %v2497_v29 = vmul.f32 -1.442695, %v1574_v28  ;;  %2915 = vpow2.f32 %v2498_v26 }
0x163a   :  { %2917 = vpow2.f32 %v2497_v29 }
0x1645   :  { %v2916_v27 = vpop.eup %2915 }
0x1646   :  { %v1583_v32 = vadd.f32 1.0, %v2916_v27 }
0x1647   :  { %v2918_v30 = vpop.eup %2917 }
0x1648   :  { %v1582_v34 = vadd.f32 1.0, %v2918_v30  ;;  %2919 = vrcp.f32 %v1583_v32 }
0x164a   :  { %2921 = vrcp.f32 %v1582_v34 }
0x1655   :  { %v2920_v35 = vpop.eup %2919 }
0x1656   :  { %v1609_v50 = vsub.f32 1.0, %v2920_v35  ;;  %v1625_v53 = vmul.f32 %v2920_v35, %v1621_v52 }
0x1657   :  { %v2922_v38 = vpop.eup %2921 }
0x1658   :  { %v1608_v55 = vsub.f32 1.0, %v2922_v38  ;;  %v1624_v58 = vmul.f32 %v2922_v38, %v1620_v56 }
0x16a6   :  { %v1591_v36 = vpop.permute.xlu1 %1590 }
0x16a7   :  { %v1595_v37 = vmul.f32 %v2920_v35, %v1591_v36 }
0x16a8   :  { %v1589_v41 = vpop.permute.xlu0 %1588 }
0x16a9   :  { %v1594_v42 = vmul.f32 %v2922_v38, %v1589_v41  ;;  %1600 = vrot.lane.b32.xlu1 %v1595_v37, %s3000_s22  ;;  %v2975_v38 = vld [vmem:[%s3697_s5] ss:$0 sm:$0xff] }
0x16aa   :  { %v1176_v41 = vadd.f32 %v2975_v38, %v3460_v31  ;;  %v1923_v38 = vld [vmem:[%s3702_s10 + $0x8] sm:$0xff] }
0x16ab   :  { %1598 = vrot.lane.b32.xlu0 %v1594_v42, %s3000_s22 }
0x171b   :  { %v1601_v43 = vpop.permute.xlu1 %1600 }
0x171c   :  { %v1605_v44 = vadd.f32 %v1601_v43, %v3477_v40 }
0x171d   :  { %v1599_v46 = vpop.permute.xlu0 %1598 }
0x171e   :  { %2923 = vtanh.f32 %v1605_v44  ;;  %v1604_v47 = vadd.f32 %v1599_v46, %v3473_v39  ;;  %v1180_v44 = vrot.slane %v1176_v41, 1 }
0x1720   :  { %2925 = vtanh.f32 %v1604_v47  ;;  %v1184_v46 = vadd.f32 %v1180_v44, %v3156_v21 }
0x1722   :  { %v2489_v47 = vmul.f32 -1.442695, %v1184_v46 }
0x172b   :  { %v2924_v48 = vpop.eup %2923 }
0x172c   :  { %1614 = vrot.lane.b32.xlu1 %v2924_v48, %s3001_s4 }
0x172d   :  { %v2926_v49 = vpop.eup %2925 }
0x172e   :  { %1612 = vrot.lane.b32.xlu0 %v2926_v49, %s3001_s4 }
0x179e   :  { %v1615_v13 = vpop.permute.xlu1 %1614 }
0x179f   :  { %v1619_v54 = vmul.f32 %v1615_v13, %v1609_v50 }
0x17a0   :  { %v1613_v57 = vpop.permute.xlu0 %1612 }
0x17a1   :  { %v3523_v5 = vadd.f32 %v1625_v53, %v1619_v54  ;;  %v1618_v59 = vmul.f32 %v1613_v57, %v1608_v55  ;;  %v1776_v57 = vsub.s32 2, %v3488_v61 }
0x17a3   :  { %v3526_v9 = vadd.f32 %v1624_v58, %v1618_v59  ;;  %v1637_v10 = vrot.slane %v3523_v5, %v1632_v60  ;;  %v1765_v52 = vrot.slane %v3523_v5, 7 }
0x17a5   :  { %v1633_v62 = vrot.slane %v3526_v9, %v1632_v60  ;;  %v1764_v53 = vrot.slane %v3526_v9, 7 }
0x17a7   :  { %v1638_v63 = vsel %vm278_vm2, %v1637_v10, %v1633_v62 }
0x17a8   :  { %1639 = vrot.lane.b32.xlu0 %v1638_v63, %s3001_s4 }
0x181a   :  { %v1640_v0 = vpop.permute.xlu0 %1639 }
0x181b   :  { %2749 = vmatmul.mubr.msk.f32.vlgmr.msra.gmra.mxu0 %vm60_vm0, %v1640_v0  ;;  %v1917_v0 = vsel %vm1238_vm3, %v3493_v11, %v3523_v5  ;;  %v1181_v5 = vrot.slane %v1176_v41, 2 }
0x18db   :  { %v1709_v1 = vpop.f32.mrf.mxu0 }
0x18dc   :  { %v1710_v4 = vadd.f32 %v3465_v33, %v1709_v1 }
0x18dd   :  { %v2750_v6 = vpop.f32.mrf.mxu0 }
0x18de   :  { %v1714_v8 = vrot.slane %v1710_v4, 6  ;;  %v1715_v12 = vrot.slane %v1710_v4, 7  ;;  %v1916_v6 = vsel %vm1238_vm3, %v3490_v2, %v3526_v9  ;;  %v1185_v2 = vadd.f32 %v1181_v5, %v3153_v19 }
0x18e0   :  { %1734 = vrot.lane.b32.xlu0 %v1715_v12, %s3000_s22  ;;  %1732 = vrot.lane.b32.xlu1 %v1714_v8, %s3000_s22  ;;  %v1718_v14 = vadd.f32 %v1714_v8, %v3473_v39  ;;  %v1719_v15 = vadd.f32 %v1715_v12, %v3477_v40  ;;  %v2490_v9 = vmul.f32 -1.442695, %v1185_v2 }
0x18e2   :  { %v2500_v16 = vmul.f32 -1.442695, %v1718_v14  ;;  %v2501_v22 = vmul.f32 -1.442695, %v1719_v15 }
0x18e4   :  { %2927 = vpow2.f32 %v2500_v16 }
0x18e5   :  { %2929 = vpow2.f32 %v2501_v22 }
0x18f1   :  { %v2928_v20 = vpop.eup %2927 }
0x18f2   :  { %v2930_v24 = vpop.eup %2929  ;;  %v1726_v51 = vadd.f32 1.0, %v2928_v20 }
0x18f3   :  { %v1727_v45 = vadd.f32 1.0, %v2930_v24 }
0x18f4   :  { %2931 = vrcp.f32 %v1726_v51 }
0x18f5   :  { %2933 = vrcp.f32 %v1727_v45 }
0x1901   :  { %v2932_v28 = vpop.eup %2931 }
0x1902   :  { %v2934_v26 = vpop.eup %2933  ;;  %v1752_v13 = vsub.f32 1.0, %v2932_v28  ;;  %v1768_v58 = vmul.f32 %v2932_v28, %v1764_v53 }
0x1903   :  { %v1753_v50 = vsub.f32 1.0, %v2934_v26  ;;  %v1769_v54 = vmul.f32 %v2934_v26, %v1765_v52 }
0x1952   :  { %v1735_v29 = vpop.permute.xlu0 %1734  ;;  %v1733_v27 = vpop.permute.xlu1 %1732 }
0x1953   :  { %v1739_v30 = vmul.f32 %v2934_v26, %v1735_v29  ;;  %v1738_v32 = vmul.f32 %v2932_v28, %v1733_v27  ;;  %v1230_v27 = vrot.slane %v3393_v18, 7  ;;  %v1924_v18 = vld [vmem:[%s3702_s10 + $0x10] sm:$0xff] }
0x1955   :  { %1744 = vrot.lane.b32.xlu0 %v1739_v30, %s3000_s22  ;;  %1742 = vrot.lane.b32.xlu1 %v1738_v32, %s3000_s22 }
0x19c7   :  { %v1745_v34 = vpop.permute.xlu0 %1744  ;;  %v1743_v35 = vpop.permute.xlu1 %1742 }
0x19c8   :  { %v1749_v36 = vadd.f32 %v1745_v34, %v3477_v40  ;;  %v1748_v37 = vadd.f32 %v1743_v35, %v3473_v39 }
0x19ca   :  { %2935 = vtanh.f32 %v1749_v36 }
0x19cb   :  { %2937 = vtanh.f32 %v1748_v37 }
0x19cc   :  { %2939 = vpow2.f32 %v2489_v47 }
0x19d7   :  { %v2936_v42 = vpop.eup %2935 }
0x19d8   :  { %v2938_v43 = vpop.eup %2937  ;;  %1758 = vrot.lane.b32.xlu0 %v2936_v42, %s3001_s4 }
0x19d9   :  { %1756 = vrot.lane.b32.xlu1 %v2938_v43, %s3001_s4  ;;  %v2940_v48 = vpop.eup %2939 }
0x19da   :  { %v1192_v49 = vadd.f32 1.0, %v2940_v48  ;;  %v1231_v48 = vrot.slane %v3391_v17, 7 }
0x19dc   :  { %1198 = vrot.lane.b32.xlu0 %v1180_v44, %s3000_s22  ;;  %2941 = vrcp.f32 %v1192_v49 }
0x19dd   :  { %2943 = vpow2.f32 %v2490_v9 }
0x19e9   :  { %v2942_v62 = vpop.eup %2941 }
0x19ea   :  { %v2944_v14 = vpop.eup %2943  ;;  %v1234_v32 = vmul.f32 %v2942_v62, %v1230_v27 }
0x19eb   :  { %v1193_v15 = vadd.f32 1.0, %v2944_v14 }
0x19ed   :  { %2945 = vrcp.f32 %v1193_v15 }
0x19fa   :  { %v2946_v24 = vpop.eup %2945 }
0x19fb   :  { %v1219_v47 = vsub.f32 1.0, %v2946_v24 }
0x1a4a   :  { %v1759_v31 = vpop.permute.xlu0 %1758 }
0x1a4b   :  { %v1763_v55 = vmul.f32 %v1759_v31, %v1753_v50  ;;  %v1757_v56 = vpop.permute.xlu1 %1756  ;;  %v1235_v50 = vmul.f32 %v2946_v24, %v1231_v48 }
0x1a4c   :  { %v1762_v59 = vmul.f32 %v1757_v56, %v1752_v13 }
0x1a4d   :  { %v3553_v60 = vadd.f32 %v1769_v54, %v1763_v55 }
0x1a4e   :  { %v3555_v10 = vadd.f32 %v1768_v58, %v1762_v59  ;;  %v1199_v63 = vpop.permute.xlu0 %1198 }
0x1a4f   :  { %v1204_v1 = vmul.f32 %v2942_v62, %v1199_v63  ;;  %v1781_v4 = vrot.slane %v3553_v60, %v1776_v57  ;;  %v3566_v61 = vsel %vm1241_vm4, %v1917_v0, %v3553_v60 }
0x1a50   :  { %v1777_v8 = vrot.slane %v3555_v10, %v1776_v57  ;;  %v3571_v12 = vsel %vm1241_vm4, %v1916_v6, %v3555_v10 }
0x1a51   :  { %1208 = vrot.lane.b32.xlu0 %v1204_v1, %s3000_s22 }
0x1a52   :  { %v1782_v11 = vsel %vm278_vm2, %v1781_v4, %v1777_v8 }
0x1a53   :  { %1783 = vrot.lane.b32.xlu1 %v1782_v11, %s3001_s4 }
0x1a57   :  { %1200 = vrot.lane.b32.xlu1 %v1181_v5, %s3000_s22 }
0x1ac3   :  { %v1209_v16 = vpop.permute.xlu0 %1208 }
0x1ac4   :  { %v1214_v22 = vadd.f32 %v1209_v16, %v3156_v21  ;;  %v1218_v21 = vsub.f32 1.0, %v2942_v62  ;;  %v1908_v16 = vrot.slane %v3555_v10, 7 }
0x1ac5   :  { %v1784_v20 = vpop.permute.xlu1 %1783 }
0x1ac6   :  { %2947 = vtanh.f32 %v1214_v22  ;;  %2760 = vmatmul.mubr.msk.f32.vlgmr.msra.gmra.mxu1 %vm60_vm0, %v1784_v20 }
0x1ac7   :  { %2775 = vmatprep.mubr.msk.f32.mxu1 %vm2999_vm1, %v2998_v3 }
0x1ac9   :  { %v1201_v51 = vpop.permute.xlu1 %1200 }
0x1aca   :  { %v1205_v45 = vmul.f32 %v2946_v24, %v1201_v51 }
0x1acc   :  { %1210 = vrot.lane.b32.xlu1 %v1205_v45, %s3000_s22 }
0x1ad3   :  { %v2948_v28 = vpop.eup %2947 }
0x1ad4   :  { %1222 = vrot.lane.b32.xlu0 %v2948_v28, %s3001_s4 }
0x1b3e   :  { %v1211_v26 = vpop.permute.xlu1 %1210 }
0x1b3f   :  { %v1215_v29 = vadd.f32 %v1211_v26, %v3153_v19  ;;  %v1925_v19 = vld [vmem:[%s3702_s10 + $0x18] sm:$0xff]  ;;  %v1909_v26 = vrot.slane %v3553_v60, 7 }
0x1b40   :  { %2762 = vmatprep.subr.mxu0 %v1925_v19 }
0x1b41   :  { %2949 = vtanh.f32 %v1215_v29  ;;  %2763 = vmatpush3.msra.mxu0 %v1925_v19 }
0x1b42   :  { %2764 = vmatprep.subr.mxu0 %v1924_v18 }
0x1b43   :  { %2765 = vmatpush3.msra.mxu0 %v1924_v18 }
0x1b44   :  { %2766 = vmatprep.subr.mxu0 %v1923_v38 }
0x1b45   :  { %2767 = vmatpush3.msra.mxu0 %v1923_v38 }
0x1b46   :  { %v1223_v30 = vpop.permute.xlu0 %1222 }
0x1b47   :  { %v1228_v34 = vmul.f32 %v1223_v30, %v1218_v21 }
0x1b49   :  { %v1236_v35 = vadd.f32 %v1234_v32, %v1228_v34 }
0x1b4b   :  { %v1257_v36 = vsel %vm1256_vm9, %v3419_v25, %v1236_v35  ;;  %v1922_v25 = vld [vmem:[%s3702_s10] sm:$0xff] }
0x1b4c   :  { %1928 = vrot.lane.b32.xlu0 %v1257_v36, %s3001_s4  ;;  %2768 = vmatprep.subr.mxu0 %v1922_v25 }
0x1b4d   :  { %2769 = vmatpush3.msra.mxu0 %v1922_v25 }
0x1b4e   :  { %v2950_v37 = vpop.eup %2949  ;;  %2783 = vmatprep.subr.mxu0 %v2998_v3 }
0x1b4f   :  { %1224 = vrot.lane.b32.xlu1 %v2950_v37, %s3001_s4 }
0x1b86   :  { %v1853_v41 = vpop.f32.mrf.mxu1 }
0x1b87   :  { %v1854_v42 = vadd.f32 %v3465_v33, %v1853_v41 }
0x1b88   :  { %v2761_v43 = vpop.f32.mrf.mxu1 }
0x1b89   :  { %v1858_v44 = vrot.slane %v1854_v42, 5  ;;  %v1859_v13 = vrot.slane %v1854_v42, 6 }
0x1b8b   :  { %1876 = vrot.lane.b32.xlu0 %v1858_v44, %s3000_s22  ;;  %v1862_v53 = vadd.f32 %v1858_v44, %v3473_v39  ;;  %v1863_v59 = vadd.f32 %v1859_v13, %v3477_v40 }
0x1b8d   :  { %v2503_v54 = vmul.f32 -1.442695, %v1862_v53  ;;  %v2357_v53 = vld [vmem:[%s3703_s11 + $0x30] sm:$0xff] }
0x1b8f   :  { %2951 = vpow2.f32 %v2503_v54  ;;  %v2356_v54 = vld [vmem:[%s3703_s11 + $0x28] sm:$0xff] }
0x1b9c   :  { %v2952_v55 = vpop.eup %2951 }
0x1b9d   :  { %v1870_v56 = vadd.f32 1.0, %v2952_v55  ;;  %v2355_v55 = vld [vmem:[%s3703_s11 + $0x20] sm:$0xff] }
0x1b9f   :  { %2953 = vrcp.f32 %v1870_v56  ;;  %v2354_v56 = vld [vmem:[%s3703_s11 + $0x18] sm:$0xff] }
0x1bac   :  { %v2954_v17 = vpop.eup %2953 }
0x1bad   :  { %v1896_v15 = vsub.f32 1.0, %v2954_v17  ;;  %v1912_v20 = vmul.f32 %v2954_v17, %v1908_v16 }
0x1bbe   :  { %v1929_v46 = vpop.permute.xlu0 %1928 }
0x1bbf   :  { %2770 = vmatprep.mubr.msk.f32.mxu0 %vm60_vm0, %v1929_v46 }
0x1bc1   :  { %v1225_v49 = vpop.permute.xlu1 %1224 }
0x1bc2   :  { %v1229_v52 = vmul.f32 %v1225_v49, %v1219_v47 }
0x1bc4   :  { %v1237_v31 = vadd.f32 %v1235_v50, %v1229_v52 }
0x1bc6   :  { %v1258_v33 = vsel %vm1256_vm9, %v3408_v23, %v1237_v31  ;;  %v2504_v23 = vmul.f32 -1.442695, %v1863_v59  ;;  %v2352_v59 = vld [vmem:[%s3703_s11 + $0x8] sm:$0xff] }
0x1bc7   :  { %1930 = vrot.lane.b32.xlu1 %v1258_v33, %s3001_s4 }
0x1bc8   :  { %2955 = vpow2.f32 %v2504_v23  ;;  %v2351_v23 = vld [vmem:[%s3703_s11] sm:$0xff] }
0x1bcb   :  { %1878 = vrot.lane.b32.xlu1 %v1859_v13, %s3000_s22  ;;  %v2358_v13 = vld [vmem:[%s3703_s11 + $0x38] sm:$0xff] }
0x1bd5   :  { %v2956_v62 = vpop.eup %2955 }
0x1bd6   :  { %v1871_v63 = vadd.f32 1.0, %v2956_v62 }
0x1bd8   :  { %2957 = vrcp.f32 %v1871_v63 }
0x1be5   :  { %v2958_v1 = vpop.eup %2957 }
0x1be6   :  { %v1913_v10 = vmul.f32 %v2958_v1, %v1909_v26 }
0x1bfd   :  { %v1877_v57 = vpop.permute.xlu0 %1876 }
0x1bfe   :  { %v1882_v58 = vmul.f32 %v2954_v17, %v1877_v57  ;;  %v2353_v17 = vld [vmem:[%s3703_s11 + $0x10] sm:$0xff]  ;;  %s3003_s11 = smov [#allocation2]  }
0x1bff   :  { %s2456_s21 = sshll.u32 %s3003_s11, 4  ;;  %s2457_s21 = int_to_ptr.vmem [resolvable:$true] %s2456_s21 }
0x1c00   :  { %1886 = vrot.lane.b32.xlu0 %v1882_v58, %s3000_s22  ;;  %s2976_s23 = scalar_lea.vmem %s2457_s21, 128  ;;  %p2981_p1 = scmp.lt.s32.totalorder %s2457_s21, %s2457_s21 }
0x1c01   :  { %p2977_p0 = scmp.ne.s32.totalorder %s2457_s21, %s2976_s23  ;;  %p2982_p2 = scmp.lt.s32.totalorder %s2976_s23, %s2976_s23 }
0x1c03   :  { %p2983_p3 = por %p2982_p2, %p2981_p1 }
0x1c05   :  { %p2984_p4 = pnand %p2983_p3, %p2977_p0 }
0x1c39   :  { %v1931_v0 = vpop.permute.xlu1 %1930 }
0x1c3a   :  { %2771 = vmatmul.mubr.msk.f32.vlgmr.msra.gmra.mxu0 %vm60_vm0, %v1931_v0 }
0x1c3b   :  { %2784 = vmatpush3.msra.mxu0 %v1929_v46  ;;  %2785 = vmatprep.mubr.msk.f32.mxu0 %vm2999_vm1, %v2998_v3 }
0x1c3c   :  { %2793 = vmatprep.subr.mxu0 %v2998_v3 }
0x1c3d   :  { %v1879_v4 = vpop.permute.xlu1 %1878 }
0x1c3e   :  { %v1883_v6 = vmul.f32 %v2958_v1, %v1879_v4 }
0x1c40   :  { %1888 = vrot.lane.b32.xlu1 %v1883_v6, %s3000_s22 }
0x1c72   :  { %v1887_v8 = vpop.permute.xlu0 %1886 }
0x1c73   :  { %v1892_v11 = vadd.f32 %v1887_v8, %v3473_v39 }
0x1c75   :  { %2959 = vtanh.f32 %v1892_v11  ;;  %v2436_v11 = vand.u32 127, %v1487_v7 }
0x1c77   :  { %vm2437_vm13 = vcmp.lt.s32.totalorder %v2436_v11, 64 }
0x1c82   :  { %v2960_v5 = vpop.eup %2959 }
0x1c83   :  { %1900 = vrot.lane.b32.xlu0 %v2960_v5, %s3001_s4 }
0x1cb2   :  { %v1889_v2 = vpop.permute.xlu1 %1888 }
0x1cb3   :  { %v1893_v9 = vadd.f32 %v1889_v2, %v3477_v40  ;;  %v1897_v40 = vsub.f32 1.0, %v2958_v1 }
0x1cb5   :  { %2961 = vtanh.f32 %v1893_v9 }
0x1cc2   :  { %v2962_v14 = vpop.eup %2961 }
0x1cc3   :  { %1902 = vrot.lane.b32.xlu1 %v2962_v14, %s3001_s4 }
0x1cf5   :  { %v1901_v22 = vpop.permute.xlu0 %1900 }
0x1cf6   :  { %v1906_v24 = vmul.f32 %v1901_v22, %v1896_v15 }
0x1cf8   :  { %v1914_v51 = vadd.f32 %v1912_v20, %v1906_v24 }
0x1cfa   :  { %v2772_v45 = vpop.f32.mrf.mxu0  ;;  %v1920_v39 = vsel %vm1244_vm5, %v3571_v12, %v1914_v51 }
0x1cfb   :  { %2012 = vrot.lane.b32.xlu0 %v1920_v39, %s3001_s4 }
0x1cfc   :  { %v2002_v28 = vpop.f32.mrf.mxu0 }
0x1cfd   :  { %2774 = vmatpush3.xpose.msk.msra.mxu1 %vm60_vm0, %v2002_v28 }
0x1cfe   :  { %2778 = vmatprep.subr.mxu1 %v2998_v3 }
0x1d35   :  { %v1903_v29 = vpop.permute.xlu1 %1902 }
0x1d36   :  { %v1907_v21 = vmul.f32 %v1903_v29, %v1897_v40 }
0x1d38   :  { %v1915_v27 = vadd.f32 %v1913_v10, %v1907_v21 }
0x1d3a   :  { %v1921_v30 = vsel %vm1244_vm5, %v3566_v61, %v1915_v27 }
0x1d3b   :  { %2090 = vrot.lane.b32.xlu1 %v1921_v30, %s3001_s4 }
0x1d6d   :  { %v3633_v12 = vpop.permute.xlu0 %2012 }
0x1d6e   :  { %2776 = vmatmul.mubr.msk.f32.vlgmr.msra.gmra.mxu1 %vm60_vm0, %v3633_v12 }
0x1d6f   :  { %2779 = vmatpush3.xpose.msk.msra.mxu1 %vm60_vm0, %v2772_v45  ;;  %2780 = vmatprep.mubr.msk.f32.mxu1 %vm2999_vm1, %v2998_v3 }
0x1d70   :  { %2788 = vmatprep.subr.mxu1 %v2998_v3 }
0x1dad   :  { %v3641_v60 = vpop.permute.xlu1 %2090 }
0x1dae   :  { %2781 = vmatmul.mubr.msk.f32.vlgmr.msra.gmra.mxu1 %vm60_vm0, %v3641_v60 }
0x1daf   :  { %2789 = vmatpush3.msra.mxu1 %v1931_v0  ;;  %2790 = vmatprep.mubr.msk.f32.mxu1 %vm2999_vm1, %v2998_v3 }
0x1e2e   :  { %v2085_v61 = vpop.f32.mrf.mxu1 }
0x1e2f   :  { %v2168_v32 = vsel %vm2167_vm10, %v2085_v61, -inf }
0x1e30   :  { %2169 = vmax.xlane.f32.xlu0 %v2168_v32  ;;  %v2777_v34 = vpop.f32.mrf.mxu1 }
0x1e6e   :  { %v2163_v35 = vpop.f32.mrf.mxu1 }
0x1e6f   :  { %v2171_v36 = vsel %vm2167_vm10, %v2163_v35, -inf }
0x1e70   :  { %2172 = vmax.xlane.f32.xlu1 %v2171_v36  ;;  %v2782_v37 = vpop.f32.mrf.mxu1 }
0x1eb9   :  { %v2170_v19 = vpop.xlane.xlu0 %2169 }
0x1eba   :  { %v2174_v18 = vsub.f32 %v2085_v61, %v2170_v19 }
0x1ebc   :  { %v2176_v38 = vmul.f32 1.442695, %v2174_v18 }
0x1ebe   :  { %2963 = vpow2.f32 %v2176_v38 }
0x1ecb   :  { %v2964_v25 = vpop.eup %2963 }
0x1ecc   :  { %v2180_v41 = vsel %vm2167_vm10, %v2964_v25, 0.0 }
0x1ecd   :  { %2181 = vadd.xlane.f32.xlu0 %v2180_v41 }
0x1ef9   :  { %v2173_v42 = vpop.xlane.xlu1 %2172 }
0x1efa   :  { %v2175_v43 = vsub.f32 %v2163_v35, %v2173_v42 }
0x1efc   :  { %v2178_v44 = vmul.f32 1.442695, %v2175_v43 }
0x1efe   :  { %2965 = vpow2.f32 %v2178_v44 }
0x1f0b   :  { %v2966_v46 = vpop.eup %2965 }
0x1f0c   :  { %v2183_v47 = vsel %vm2167_vm10, %v2966_v46, 0.0 }
0x1f0d   :  { %2184 = vadd.xlane.f32.xlu0 %v2183_v47 }
0x1f56   :  { %v2182_v48 = vpop.xlane.xlu0 %2181 }
0x1f57   :  { %2967 = vrcp.f32 %v2182_v48 }
0x1f64   :  { %v2968_v49 = vpop.eup %2967 }
0x1f65   :  { %v2188_v50 = vmul.f32 %v2968_v49, %v2964_v25 }
0x1f67   :  { %2786 = vmatmul.mubr.msk.f32.vlgmr.msra.gmra.mxu0 %vm2191_vm11, %v2188_v50 }
0x1f68   :  { %2809 = vmatprep.mubr.msk.f32.mxu0 %vm2999_vm1, %v2998_v3  ;;  %2794 = vmatpush3.msra.mxu0 %v2358_v13 }
0x1f69   :  { %2795 = vmatprep.subr.mxu0 %v2998_v3 }
0x1f6a   :  { %2796 = vmatpush3.msra.mxu0 %v2357_v53 }
0x1f6b   :  { %2797 = vmatprep.subr.mxu0 %v2998_v3 }
0x1f6c   :  { %2798 = vmatpush3.msra.mxu0 %v2356_v54 }
0x1f6d   :  { %2799 = vmatprep.subr.mxu0 %v2998_v3 }
0x1f6e   :  { %2800 = vmatpush3.msra.mxu0 %v2355_v55 }
0x1f6f   :  { %2801 = vmatprep.subr.mxu0 %v2998_v3 }
0x1f70   :  { %2802 = vmatpush3.msra.mxu0 %v2354_v56 }
0x1f71   :  { %2803 = vmatprep.subr.mxu0 %v2998_v3 }
0x1f72   :  { %2804 = vmatpush3.msra.mxu0 %v2353_v17 }
0x1f73   :  { %2805 = vmatprep.subr.mxu0 %v2998_v3 }
0x1f74   :  { %2806 = vmatpush3.msra.mxu0 %v2352_v59 }
0x1f75   :  { %2807 = vmatprep.subr.mxu0 %v2998_v3 }
0x1f76   :  { %2808 = vmatpush3.msra.mxu0 %v2351_v23 }
0x1f96   :  { %v2185_v52 = vpop.xlane.xlu0 %2184 }
0x1f97   :  { %2969 = vrcp.f32 %v2185_v52 }
0x1fa4   :  { %v2970_v31 = vpop.eup %2969 }
0x1fa5   :  { %v2189_v33 = vmul.f32 %v2970_v31, %v2966_v46 }
0x1fa7   :  { %2791 = vmatmul.mubr.msk.f32.vlgmr.msra.gmra.mxu1 %vm2191_vm11, %v2189_v33 }
0x2027   :  { %v2261_v57 = vpop.f32.mrf.mxu0 }
0x2028   :  { %2343 = vrot.lane.b32.xlu1 %v2261_v57, %s3002_s20 }
0x2029   :  { %v2787_v58 = vpop.f32.mrf.mxu0 }
0x2067   :  { %v2335_v62 = vpop.f32.mrf.mxu1 }
0x2068   :  { %2345 = vrot.lane.b32.xlu0 %v2335_v62, %s3002_s20 }
0x2069   :  { %v2792_v63 = vpop.f32.mrf.mxu1 }
0x209a   :  { %v2344_v0 = vpop.permute.xlu1 %2343 }
0x209b   :  { %v2349_v4 = vsel %vm60_vm0, %v3633_v12, %v2344_v0 }
0x20da   :  { %v2346_v1 = vpop.permute.xlu0 %2345 }
0x20db   :  { %v2350_v6 = vsel %vm60_vm0, %v3641_v60, %v2346_v1 }
0x20dc   :  { %v2361_v8 = vcombine.low %v2349_v4, %v2350_v6 }
0x20de   :  { %2810 = vmatmul.mubr.msk.f32.vlgmr.msra.gmra.mxu0 %vm2362_vm12, %v2361_v8 }
0x219e   :  { %v2431_v5 = vpop.f32.mrf.mxu0 }
0x219f   :  { %v2438_v3 = vsel %vm2437_vm13, %v2431_v5, -1e+30 }
0x21a0   :  { %2439 = vmax.xlane.f32.xlu1 %v2438_v3  ;;  %v2811_v2 = vpop.f32.mrf.mxu0 }
0x2229   :  { %v2440_v9 = vpop.xlane.xlu1 %2439 }
0x222a   :  { %v2441_v14 = vsub.f32 %v2438_v3, %v2440_v9 }
0x222c   :  { %v2442_v15 = vmul.f32 1.442695, %v2441_v14 }
0x222e   :  { %2971 = vpow2.f32 %v2442_v15 }
0x223b   :  { %v2972_v16 = vpop.eup %2971 }
0x223c   :  { %2444 = vadd.xlane.f32.xlu0 %v2972_v16 }
0x22c5   :  { %v2445_v22 = vpop.xlane.xlu0 %2444 }
0x22c6   :  { %2973 = vlog2.f32 %v2445_v22 }
0x22d3   :  { %v2974_v20 = vpop.eup %2973 }
0x22d4   :  { %v2447_v24 = vmul.f32 0.6931472, %v2974_v20 }
0x22d6   :  { %v2448_v51 = vsub.f32 %v2441_v14, %v2447_v24 }
0x22d8   :  { %2449 = vst [vmem:[#allocation2] sm:$0xff] %v2448_v51 }
0x22d9   :  { %2987 = shalt.err (!%p2984_p4)
}
0x22da   :  { %2459 = dma.vmem_to_hbm [thread:$0]  %s2457_s21, 128, %s3704_s12, [#allocation3]  }
0x22db   :  { %2996 = dma.done.wait [#allocation3], 128  }
0x22dc   :  { %2997 = vsyncadd [#allocation3], 4294967168 }
0x22dd   :  { %2463 = vsyncpa [#allocation3], 1 }

</bundles_post_ra>
